<compile_context>
chip_gen: v5e
topology: v5e:2x2
jax: 0.10.0
libtpu: 0.0.40
codegen_flags: <defaults>
</compile_context>

<pallas_src>
import jax
import jax.numpy as jnp
import numpy as np
from jax.experimental import pallas as pl
from jax.experimental.pallas import tpu as pltpu

EPS = 1e-5
LANE = 128
BATCH_ALIGN = 16          # covers bf16 sublane packing (16, 128); fine for f32 too

# MXU operand dtype. bf16 is the perf default (v6e/v7x full-rate MXU, half the DMA
# bytes); accumulation is always f32. The f32 path is still built in __main__ for
# the tight numerical check.
MXU_DTYPE = jnp.bfloat16


def _round_up(x, m):
    return (x + m - 1) // m * m


# -----------------------------------------------------------------------------
# Fused kernels: stem projection + (optional mixup lerp) + folded-BN head.
# TODO(synk): the real `stem` is an external pretrained multimodal transformer
# (passed into HateClassifier.__init__); it is synthesized here as a single
# tanh(linear) projection of pooled visual / positional / text features.
# -----------------------------------------------------------------------------
def fused_infer_kernel(pooled_ref, ws_ref, bs_ref,
                       w1_ref, b1_ref, w2_ref, b2_ref, out_ref):
    ws = ws_ref[...]                                        # (F, 768)
    x = pooled_ref[...].astype(ws.dtype)                    # (TB, F)
    e = jnp.tanh(jnp.dot(x, ws, preferred_element_type=jnp.float32) + bs_ref[...])
    w1 = w1_ref[...]                                        # (768, H_pad), BN1 folded
    h = jnp.dot(e.astype(w1.dtype), w1, preferred_element_type=jnp.float32) + b1_ref[...]
    h = jnp.maximum(h, 0.0)                                 # ReLU (padded lanes stay 0)
    w2 = w2_ref[...]                                        # (H_pad, 128), BN2 folded, zero-padded
    out_ref[...] = (jnp.dot(h.astype(w2.dtype), w2,
                            preferred_element_type=jnp.float32) + b2_ref[...])


def fused_mixup_kernel(lam_ref, pooled_ref, pooled_shuf_ref, ws_ref, bs_ref,
                       w1_ref, b1_ref, w2_ref, b2_ref, out_ref):
    lam = lam_ref[0]
    ws = ws_ref[...]
    bs = bs_ref[...]
    tb = pooled_ref.shape[0]
    # Stack both streams into one LHS: the stem RHS is staged in the MXU once and
    # a single matmul with doubled M pipelines better than two back-to-back dots.
    x = jnp.concatenate([pooled_ref[...], pooled_shuf_ref[...]], axis=0).astype(ws.dtype)
    e_both = jnp.tanh(jnp.dot(x, ws, preferred_element_type=jnp.float32) + bs)
    e, e2 = e_both[:tb], e_both[tb:]
    # torch.lerp(embs[shuffle], embs, lam) = e2 + lam * (e - e2)
    emb = e2 + lam * (e - e2)
    w1 = w1_ref[...]
    h = jnp.dot(emb.astype(w1.dtype), w1, preferred_element_type=jnp.float32) + b1_ref[...]
    h = jnp.maximum(h, 0.0)
    w2 = w2_ref[...]
    out_ref[...] = (jnp.dot(h.astype(w2.dtype), w2,
                            preferred_element_type=jnp.float32) + b2_ref[...])


# -----------------------------------------------------------------------------
# Parameter preparation (done once, outside the kernel)
# -----------------------------------------------------------------------------
def prepare_stem_params(stem_raw, mxu_dtype=MXU_DTYPE):
    """Stem weights in MXU dtype. No K-padding: the MXU pads K internally."""
    return {
        "tok_table": stem_raw["tok_table"],
        "typ_table": stem_raw["typ_table"],
        "w": stem_raw["w"].astype(mxu_dtype),              # (F_pooled, 768)
        "b": stem_raw["b"].astype(jnp.float32),            # (1, 768)
        "mxu_dtype": mxu_dtype,
    }


def prepare_head_params(p, mxu_dtype=MXU_DTYPE):
    """Fold eval-mode BN1/BN2 into the two bias-free linears; pad N dims to 128 lanes."""
    nf, h = p["w1"].shape
    n_out = p["w2"].shape[1]
    h_pad = _round_up(h, LANE)
    o_pad = _round_up(max(n_out, LANE), LANE)               # lane-dense output (>=128)

    scale1 = p["g1"] * jax.lax.rsqrt(p["v1"] + EPS)         # (1, NF)
    w1f = scale1.reshape(-1, 1) * p["w1"]                   # (NF, H)
    b1f = (p["b1"] - p["m1"] * scale1) @ p["w1"]            # (1, H)

    scale2 = p["g2"] * jax.lax.rsqrt(p["v2"] + EPS)         # (1, H)
    w2f = scale2.reshape(-1, 1) * p["w2"]                   # (H, n_out)
    b2f = (p["b2"] - p["m2"] * scale2) @ p["w2"]            # (1, n_out)

    w1p = jnp.pad(w1f, ((0, 0), (0, h_pad - h))).astype(mxu_dtype)              # (NF, H_pad)
    b1p = jnp.pad(b1f, ((0, 0), (0, h_pad - h))).astype(jnp.float32)            # (1, H_pad)
    w2p = jnp.pad(w2f, ((0, h_pad - h), (0, o_pad - n_out))).astype(mxu_dtype)  # (H_pad, 128)
    b2p = jnp.pad(b2f, ((0, 0), (0, o_pad - n_out))).astype(jnp.float32)        # (1, 128)

    return {"w1": w1p, "b1": b1p, "w2": w2p, "b2": b2p, "n_out": n_out}


# -----------------------------------------------------------------------------
# Tiling / VMEM sizing helpers
# -----------------------------------------------------------------------------
def _pick_tile(b, tile_b):
    # Target >=2 grid steps whenever possible (v7x: 2 TensorCores split the
    # "parallel" grid axis) and derive the tile from the batch so the worst-case
    # padding waste is bounded (no B=513 -> 1024 doubling).
    nb_target = max(2, pl.cdiv(b, tile_b))
    tb = min(tile_b, _round_up(pl.cdiv(b, nb_target), BATCH_ALIGN))
    return max(tb, BATCH_ALIGN)


def _vmem_limit_bytes(tb, f_pooled, o_pad, n_streams, act_itemsize, weight_bytes):
    acts = 2 * n_streams * tb * f_pooled * act_itemsize     # double-buffered activation streams
    outs = 2 * tb * o_pad * 4                               # double-buffered f32 output
    interm = (n_streams * 768 + 2 * o_pad) * tb * 4         # f32 e/e2 + h + out temporaries
    est = acts + outs + 2 * weight_bytes + interm
    # 2x headroom, floor at 32 MiB, cap safely under v7x's 64 MiB physical VMEM.
    return int(min(56 << 20, max(32 << 20, 2 * est)))


# -----------------------------------------------------------------------------
# Pallas wrapper: batch-tiled grid over the fused kernel
# -----------------------------------------------------------------------------
def run_fused(pooled, stem_p, head_p, lam=None, shuffle=None, tile_b=1024):
    b, f_pooled = pooled.shape
    o_pad = head_p["w2"].shape[1]
    mxu_dtype = stem_p["mxu_dtype"]

    # Cast the streamed activations to the MXU dtype (fuses into the pooling pass;
    # halves the per-row DMA bytes in bf16).
    pooled = pooled.astype(mxu_dtype)
    pooled_shuf = None
    if lam is not None:
        # stem is row-wise, so stem(pooled)[shuffle] == stem(pooled[shuffle]): gather
        # the small (F_pooled-wide) pooled features instead of the 768-wide embedding.
        # TODO(synk): fold this gather into the kernel (scalar-prefetch the shuffle
        # indices + in-kernel row gather) to avoid the (B, F_pooled) HBM round-trip.
        pooled_shuf = pooled[shuffle]

    tb = _pick_tile(b, tile_b)
    b_pad = _round_up(b, tb)
    if b_pad != b:
        pooled = jnp.pad(pooled, ((0, b_pad - b), (0, 0)))
        if pooled_shuf is not None:
            pooled_shuf = jnp.pad(pooled_shuf, ((0, b_pad - b), (0, 0)))
    nb = b_pad // tb

    act_spec = pl.BlockSpec((tb, f_pooled), lambda i: (i, 0))
    out_spec = pl.BlockSpec((tb, o_pad), lambda i: (i, 0))
    weight_args = (stem_p["w"], stem_p["b"],
                   head_p["w1"], head_p["b1"], head_p["w2"], head_p["b2"])
    weight_bytes = sum(int(a.size) * a.dtype.itemsize for a in weight_args)

    n_streams = 1 if lam is None else 2
    cparams = pltpu.CompilerParams(
        dimension_semantics=("parallel",),
        vmem_limit_bytes=_vmem_limit_bytes(tb, f_pooled, o_pad, n_streams,
                                           np.dtype(mxu_dtype).itemsize, weight_bytes),
    )
    out_shape = jax.ShapeDtypeStruct((b_pad, o_pad), jnp.float32)

    def build_and_call(single_buffer_weights):
        if single_buffer_weights:
            # Constant index_map => weights never change across the grid; single-buffer
            # them to save VMEM headroom for larger activation tiles.
            w_specs = [pl.BlockSpec(a.shape, lambda i: (0, 0),
                                    pipeline_mode=pl.Buffered(1)) for a in weight_args]
        else:
            w_specs = [pl.BlockSpec(a.shape, lambda i: (0, 0)) for a in weight_args]

        if lam is None:
            return pl.pallas_call(
                fused_infer_kernel,
                grid=(nb,),
                in_specs=[act_spec] + w_specs,
                out_specs=out_spec,
                out_shape=out_shape,
                compiler_params=cparams,
            )(pooled, *weight_args)

        lam_arr = jnp.asarray([lam], dtype=jnp.float32)
        return pl.pallas_call(
            fused_mixup_kernel,
            grid=(nb,),
            in_specs=[pl.BlockSpec(memory_space=pltpu.MemorySpace.SMEM),
                      act_spec, act_spec] + w_specs,
            out_specs=out_spec,
            out_shape=out_shape,
            compiler_params=cparams,
        )(lam_arr, pooled, pooled_shuf, *weight_args)

    try:
        out = build_and_call(single_buffer_weights=True)
    except Exception:
        # pl.Buffered(1) not accepted on this jax/backend -> default double-buffering.
        out = build_and_call(single_buffer_weights=False)

    return out[:b, :head_p["n_out"]]


# -----------------------------------------------------------------------------
# HateClassifier forward (pooling glue in plain JAX, hot path in Pallas)
# -----------------------------------------------------------------------------
def pool_features(stem_p, batch):
    _id, vis_feats, vis_pe, input_ids, token_type_ids, attention_mask = batch
    vis_pool = jnp.mean(vis_feats, axis=1)                               # (B, Dvis)
    pe_pool = jnp.mean(vis_pe, axis=1)                                   # (B, Dpe)
    tok_emb = stem_p["tok_table"][input_ids]                             # (B, S, Dtok)
    typ_emb = stem_p["typ_table"][token_type_ids]                        # (B, S, Dtok)
    mask = attention_mask.astype(jnp.float32)[..., None]                 # (B, S, 1)
    denom = jnp.maximum(jnp.sum(mask, axis=1), 1.0)
    txt_pool = jnp.sum((tok_emb + typ_emb) * mask, axis=1) / denom       # (B, Dtok)
    return jnp.concatenate([vis_pool, pe_pool, txt_pool], axis=-1)       # (B, F_pooled)


def hate_classifier_forward(stem_p, head_p, batch, lam=None, shuffle=None, tile_b=1024):
    pooled = pool_features(stem_p, batch)
    return run_fused(pooled, stem_p, head_p, lam=lam, shuffle=shuffle, tile_b=tile_b)


# -----------------------------------------------------------------------------
# Pure-JAX reference (original, un-folded math) for a sanity check
# -----------------------------------------------------------------------------
def reference_forward(stem_raw, head_raw, pooled, lam=None, shuffle=None):
    embs = jnp.tanh(pooled @ stem_raw["w"] + stem_raw["b"])
    if lam is not None:
        e2 = embs[shuffle]
        embs = e2 + lam * (embs - e2)
    p = head_raw
    h = (embs - p["m1"]) * jax.lax.rsqrt(p["v1"] + EPS) * p["g1"] + p["b1"]
    h = jnp.maximum(h @ p["w1"], 0.0)
    h = (h - p["m2"]) * jax.lax.rsqrt(p["v2"] + EPS) * p["g2"] + p["b2"]
    return h @ p["w2"]


if __name__ == "__main__":
    # Small shapes: batch=2, regions=8, vis_dim=64, pe_dim=16, seq=8, tok_dim=64
    # head_linear (args.head_linear) = 32, n_out = 2, feature dim = 768.
    B, R, DVIS, DPE, S, DTOK, VOCAB, H, NF = 2, 8, 64, 16, 8, 64, 100, 32, 768

    key = jax.random.PRNGKey(0)
    keys = jax.random.split(key, 16)

    vis_feats = jax.random.normal(keys[0], (B, R, DVIS), dtype=jnp.float32)
    vis_pe = jax.random.normal(keys[1], (B, R, DPE), dtype=jnp.float32)
    input_ids = jax.random.randint(keys[2], (B, S), 0, VOCAB)
    token_type_ids = jax.random.randint(keys[3], (B, S), 0, 2)
    attention_mask = jnp.ones((B, S), dtype=jnp.int32)
    ids = jnp.arange(B, dtype=jnp.int32)
    batch = (ids, vis_feats, vis_pe, input_ids, token_type_ids, attention_mask)

    F_POOLED = DVIS + DPE + DTOK
    stem_raw = {
        "tok_table": 0.02 * jax.random.normal(keys[4], (VOCAB, DTOK), dtype=jnp.float32),
        "typ_table": 0.02 * jax.random.normal(keys[5], (2, DTOK), dtype=jnp.float32),
        "w": 0.05 * jax.random.normal(keys[6], (F_POOLED, NF), dtype=jnp.float32),
        "b": 0.01 * jax.random.normal(keys[7], (1, NF), dtype=jnp.float32),
    }

    head_raw = {
        # BatchNorm1d(768): weight, bias, running_mean, running_var (eval)
        "g1": jnp.ones((1, NF), jnp.float32) + 0.1 * jax.random.normal(keys[8], (1, NF)),
        "b1": 0.1 * jax.random.normal(keys[9], (1, NF), dtype=jnp.float32),
        "m1": 0.1 * jax.random.normal(keys[10], (1, NF), dtype=jnp.float32),
        "v1": jnp.abs(jnp.ones((1, NF), jnp.float32)
                      + 0.1 * jax.random.normal(keys[11], (1, NF))),
        # Linear(768, H, bias=False), weight pre-transposed to (768, H)
        "w1": 0.05 * jax.random.normal(keys[12], (NF, H), dtype=jnp.float32),
        # BatchNorm1d(H)
        "g2": jnp.ones((1, H), jnp.float32),
        "b2": jnp.zeros((1, H), jnp.float32),
        "m2": 0.1 * jax.random.normal(keys[13], (1, H), dtype=jnp.float32),
        "v2": jnp.abs(jnp.ones((1, H), jnp.float32)
                      + 0.1 * jax.random.normal(keys[14], (1, H))),
        # Linear(H, 2, bias=False), weight pre-transposed to (H, 2)
        "w2": 0.05 * jax.random.normal(keys[15], (H, 2), dtype=jnp.float32),
    }

    lam = 0.7
    shuffle = jnp.array([1, 0], dtype=jnp.int32)

    # Pure-JAX reference (f32, un-folded BN math).
    pooled_ref = pool_features(stem_raw, batch)
    ref_mix = reference_forward(stem_raw, head_raw, pooled_ref,
                                lam=jnp.float32(lam), shuffle=shuffle)
    ref_inf = reference_forward(stem_raw, head_raw, pooled_ref)

    # Bit-tight check in f32, looser check on the bf16 perf default.
    for mxu_dtype, rtol, atol in ((jnp.float32, 1e-3, 1e-3),
                                  (jnp.bfloat16, 2e-2, 2e-2)):
        stem_p = prepare_stem_params(stem_raw, mxu_dtype)
        head_p = prepare_head_params(head_raw, mxu_dtype)

        # --- mixup (training) path: lam scalar, shuffle = batch permutation ---
        logits_mix = hate_classifier_forward(stem_p, head_p, batch,
                                             lam=lam, shuffle=shuffle)
        logits_mix = jax.block_until_ready(logits_mix)
        assert logits_mix.shape == (B, 2) and logits_mix.dtype == jnp.float32

        # --- inference path: lam is None (no lerp, no duplicate stream) ---
        logits_inf = hate_classifier_forward(stem_p, head_p, batch)
        logits_inf = jax.block_until_ready(logits_inf)
        assert logits_inf.shape == (B, 2) and logits_inf.dtype == jnp.float32

        np.testing.assert_allclose(np.asarray(logits_mix), np.asarray(ref_mix),
                                   rtol=rtol, atol=atol)
        np.testing.assert_allclose(np.asarray(logits_inf), np.asarray(ref_inf),
                                   rtol=rtol, atol=atol)

    print("KERNEL_OK")
</pallas_src>

<mosaic_0001>
module attributes {stable_mosaic.version = 11 : i64} {
  func.func @fused_mixup_kernel(%arg0: i32, %arg1: memref<1xf32, #tpu.memory_space<smem>>, %arg2: memref<16x144xf32, #tpu.memory_space<vmem>>, %arg3: memref<16x144xf32, #tpu.memory_space<vmem>>, %arg4: memref<144x768xf32, #tpu.memory_space<vmem>>, %arg5: memref<1x768xf32, #tpu.memory_space<vmem>>, %arg6: memref<768x128xf32, #tpu.memory_space<vmem>>, %arg7: memref<1x128xf32, #tpu.memory_space<vmem>>, %arg8: memref<128x128xf32, #tpu.memory_space<vmem>>, %arg9: memref<1x128xf32, #tpu.memory_space<vmem>>, %arg10: memref<16x128xf32, #tpu.memory_space<vmem>>) attributes {dimension_semantics = [#tpu.dimension_semantics<parallel>], iteration_bounds = array<i64: 1>, scalar_prefetch = 0 : i64, scratch_operands = 0 : i64, tpu.core_type = #tpu.core_type<tc>, window_params = [{transform_indices = @transform_0, window_bounds = array<i64: 1>}, {transform_indices = @transform_1, window_bounds = array<i64: 16, 144>}, {transform_indices = @transform_2, window_bounds = array<i64: 16, 144>}, {pipeline_mode = #tpu.pipeline_mode<synchronous>, transform_indices = @transform_3, window_bounds = array<i64: 144, 768>}, {pipeline_mode = #tpu.pipeline_mode<synchronous>, transform_indices = @transform_4, window_bounds = array<i64: 1, 768>}, {pipeline_mode = #tpu.pipeline_mode<synchronous>, transform_indices = @transform_5, window_bounds = array<i64: 768, 128>}, {pipeline_mode = #tpu.pipeline_mode<synchronous>, transform_indices = @transform_6, window_bounds = array<i64: 1, 128>}, {pipeline_mode = #tpu.pipeline_mode<synchronous>, transform_indices = @transform_7, window_bounds = array<i64: 128, 128>}, {pipeline_mode = #tpu.pipeline_mode<synchronous>, transform_indices = @transform_8, window_bounds = array<i64: 1, 128>}, {transform_indices = @transform_9, window_bounds = array<i64: 16, 128>}]} {
    %c0 = arith.constant 0 : index
    %0 = memref.load %arg1[%c0] : memref<1xf32, #tpu.memory_space<smem>>
    %c0_0 = arith.constant 0 : index
    %c0_1 = arith.constant 0 : index
    %1 = vector.load %arg4[%c0_0, %c0_1] : memref<144x768xf32, #tpu.memory_space<vmem>>, vector<144x768xf32>
    %c0_2 = arith.constant 0 : index
    %c0_3 = arith.constant 0 : index
    %2 = vector.load %arg5[%c0_2, %c0_3] : memref<1x768xf32, #tpu.memory_space<vmem>>, vector<1x768xf32>
    %c0_4 = arith.constant 0 : index
    %c0_5 = arith.constant 0 : index
    %3 = vector.load %arg2[%c0_4, %c0_5] : memref<16x144xf32, #tpu.memory_space<vmem>>, vector<16x144xf32>
    %c0_6 = arith.constant 0 : index
    %c0_7 = arith.constant 0 : index
    %4 = vector.load %arg3[%c0_6, %c0_7] : memref<16x144xf32, #tpu.memory_space<vmem>>, vector<16x144xf32>
    %5 = tpu.concatenate %3, %4 in 0 : vector<16x144xf32>, vector<16x144xf32> -> vector<32x144xf32>
    %cst = arith.constant dense<0.000000e+00> : vector<32x768xf32>
    %6 = tpu.matmul %5, %1, %cst {dimension_numbers = #tpu.dot_dimension_numbers<[1], [0], [0], [1], [0, 0, 1, 1], [], []>} : vector<32x144xf32>, vector<144x768xf32>, vector<32x768xf32> -> vector<32x768xf32>
    %7 = vector.broadcast %2 : vector<1x768xf32> to vector<32x768xf32>
    %8 = arith.addf %6, %7 : vector<32x768xf32>
    %9 = math.tanh %8 : vector<32x768xf32>
    %10 = vector.extract_strided_slice %9 {offsets = [0, 0], sizes = [16, 768], strides = [1, 1]} : vector<32x768xf32> to vector<16x768xf32>
    %11 = vector.extract_strided_slice %9 {offsets = [16, 0], sizes = [16, 768], strides = [1, 1]} : vector<32x768xf32> to vector<16x768xf32>
    %12 = arith.subf %10, %11 : vector<16x768xf32>
    %13 = vector.broadcast %0 : f32 to vector<16x768xf32>
    %14 = arith.mulf %13, %12 : vector<16x768xf32>
    %15 = arith.addf %11, %14 : vector<16x768xf32>
    %c0_8 = arith.constant 0 : index
    %c0_9 = arith.constant 0 : index
    %16 = vector.load %arg6[%c0_8, %c0_9] : memref<768x128xf32, #tpu.memory_space<vmem>>, vector<768x128xf32>
    %cst_10 = arith.constant dense<0.000000e+00> : vector<16x128xf32>
    %17 = tpu.matmul %15, %16, %cst_10 {dimension_numbers = #tpu.dot_dimension_numbers<[1], [0], [0], [1], [0, 0, 1, 1], [], []>} : vector<16x768xf32>, vector<768x128xf32>, vector<16x128xf32> -> vector<16x128xf32>
    %c0_11 = arith.constant 0 : index
    %c0_12 = arith.constant 0 : index
    %18 = vector.load %arg7[%c0_11, %c0_12] : memref<1x128xf32, #tpu.memory_space<vmem>>, vector<1x128xf32>
    %19 = vector.broadcast %18 : vector<1x128xf32> to vector<16x128xf32>
    %20 = arith.addf %17, %19 : vector<16x128xf32>
    %cst_13 = arith.constant 0.000000e+00 : f32
    %21 = vector.broadcast %cst_13 : f32 to vector<16x128xf32>
    %22 = arith.maximumf %20, %21 : vector<16x128xf32>
    %c0_14 = arith.constant 0 : index
    %c0_15 = arith.constant 0 : index
    %23 = vector.load %arg8[%c0_14, %c0_15] : memref<128x128xf32, #tpu.memory_space<vmem>>, vector<128x128xf32>
    %cst_16 = arith.constant dense<0.000000e+00> : vector<16x128xf32>
    %24 = tpu.matmul %22, %23, %cst_16 {dimension_numbers = #tpu.dot_dimension_numbers<[1], [0], [0], [1], [0, 0, 1, 1], [], []>} : vector<16x128xf32>, vector<128x128xf32>, vector<16x128xf32> -> vector<16x128xf32>
    %c0_17 = arith.constant 0 : index
    %c0_18 = arith.constant 0 : index
    %25 = vector.load %arg9[%c0_17, %c0_18] : memref<1x128xf32, #tpu.memory_space<vmem>>, vector<1x128xf32>
    %26 = vector.broadcast %25 : vector<1x128xf32> to vector<16x128xf32>
    %27 = arith.addf %24, %26 : vector<16x128xf32>
    %c0_19 = arith.constant 0 : index
    %c0_20 = arith.constant 0 : index
    %28 = vector.load %arg10[%c0_19, %c0_20] : memref<16x128xf32, #tpu.memory_space<vmem>>, vector<16x128xf32>
    tpu.vector_store %arg10[%c0_19, %c0_20], %27 {strides = array<i32>} : memref<16x128xf32, #tpu.memory_space<vmem>>, vector<16x128xf32>,
    return
  }
  func.func @transform_0(%arg0: i32) -> i32 {
    %c0_i32 = arith.constant 0 : i32
    %c0_i32_0 = arith.constant 0 : i32
    return %c0_i32 : i32
  }
  func.func @transform_1(%arg0: i32) -> (i32, i32) {
    %c0_i32 = arith.constant 0 : i32
    %c0_i32_0 = arith.constant 0 : i32
    return %arg0, %c0_i32 : i32, i32
  }
  func.func @transform_2(%arg0: i32) -> (i32, i32) {
    %c0_i32 = arith.constant 0 : i32
    %c0_i32_0 = arith.constant 0 : i32
    return %arg0, %c0_i32 : i32, i32
  }
  func.func @transform_3(%arg0: i32) -> (i32, i32) {
    %c0_i32 = arith.constant 0 : i32
    %c0_i32_0 = arith.constant 0 : i32
    %c0_i32_1 = arith.constant 0 : i32
    return %c0_i32, %c0_i32_0 : i32, i32
  }
  func.func @transform_4(%arg0: i32) -> (i32, i32) {
    %c0_i32 = arith.constant 0 : i32
    %c0_i32_0 = arith.constant 0 : i32
    %c0_i32_1 = arith.constant 0 : i32
    return %c0_i32, %c0_i32_0 : i32, i32
  }
  func.func @transform_5(%arg0: i32) -> (i32, i32) {
    %c0_i32 = arith.constant 0 : i32
    %c0_i32_0 = arith.constant 0 : i32
    %c0_i32_1 = arith.constant 0 : i32
    return %c0_i32, %c0_i32_0 : i32, i32
  }
  func.func @transform_6(%arg0: i32) -> (i32, i32) {
    %c0_i32 = arith.constant 0 : i32
    %c0_i32_0 = arith.constant 0 : i32
    %c0_i32_1 = arith.constant 0 : i32
    return %c0_i32, %c0_i32_0 : i32, i32
  }
  func.func @transform_7(%arg0: i32) -> (i32, i32) {
    %c0_i32 = arith.constant 0 : i32
    %c0_i32_0 = arith.constant 0 : i32
    %c0_i32_1 = arith.constant 0 : i32
    return %c0_i32, %c0_i32_0 : i32, i32
  }
  func.func @transform_8(%arg0: i32) -> (i32, i32) {
    %c0_i32 = arith.constant 0 : i32
    %c0_i32_0 = arith.constant 0 : i32
    %c0_i32_1 = arith.constant 0 : i32
    return %c0_i32, %c0_i32_0 : i32, i32
  }
  func.func @transform_9(%arg0: i32) -> (i32, i32) {
    %c0_i32 = arith.constant 0 : i32
    %c0_i32_0 = arith.constant 0 : i32
    return %arg0, %c0_i32 : i32, i32
  }
}

module attributes {stable_mosaic.version = 11 : i64} {
  func.func @fused_mixup_kernel(%arg0: i32, %arg1: memref<1xf32, #tpu.memory_space<smem>>, %arg2: memref<16x144xf32, #tpu.memory_space<vmem>>, %arg3: memref<16x144xf32, #tpu.memory_space<vmem>>, %arg4: memref<144x768xf32, #tpu.memory_space<vmem>>, %arg5: memref<1x768xf32, #tpu.memory_space<vmem>>, %arg6: memref<768x128xf32, #tpu.memory_space<vmem>>, %arg7: memref<1x128xf32, #tpu.memory_space<vmem>>, %arg8: memref<128x128xf32, #tpu.memory_space<vmem>>, %arg9: memref<1x128xf32, #tpu.memory_space<vmem>>, %arg10: memref<16x128xf32, #tpu.memory_space<vmem>>) attributes {dimension_semantics = [#tpu.dimension_semantics<parallel>], iteration_bounds = array<i64: 1>, scalar_prefetch = 0 : i64, scratch_operands = 0 : i64, tpu.core_type = #tpu.core_type<tc>, window_params = [{transform_indices = @transform_0, window_bounds = array<i64: 1>}, {transform_indices = @transform_1, window_bounds = array<i64: 16, 144>}, {transform_indices = @transform_2, window_bounds = array<i64: 16, 144>}, {pipeline_mode = #tpu.pipeline_mode<synchronous>, transform_indices = @transform_3, window_bounds = array<i64: 144, 768>}, {pipeline_mode = #tpu.pipeline_mode<synchronous>, transform_indices = @transform_4, window_bounds = array<i64: 1, 768>}, {pipeline_mode = #tpu.pipeline_mode<synchronous>, transform_indices = @transform_5, window_bounds = array<i64: 768, 128>}, {pipeline_mode = #tpu.pipeline_mode<synchronous>, transform_indices = @transform_6, window_bounds = array<i64: 1, 128>}, {pipeline_mode = #tpu.pipeline_mode<synchronous>, transform_indices = @transform_7, window_bounds = array<i64: 128, 128>}, {pipeline_mode = #tpu.pipeline_mode<synchronous>, transform_indices = @transform_8, window_bounds = array<i64: 1, 128>}, {transform_indices = @transform_9, window_bounds = array<i64: 16, 128>}]} {
    %c0 = arith.constant 0 : index
    %0 = memref.load %arg1[%c0] : memref<1xf32, #tpu.memory_space<smem>>
    %c0_0 = arith.constant 0 : index
    %c0_1 = arith.constant 0 : index
    %1 = vector.load %arg4[%c0_0, %c0_1] : memref<144x768xf32, #tpu.memory_space<vmem>>, vector<144x768xf32>
    %c0_2 = arith.constant 0 : index
    %c0_3 = arith.constant 0 : index
    %2 = vector.load %arg5[%c0_2, %c0_3] : memref<1x768xf32, #tpu.memory_space<vmem>>, vector<1x768xf32>
    %c0_4 = arith.constant 0 : index
    %c0_5 = arith.constant 0 : index
    %3 = vector.load %arg2[%c0_4, %c0_5] : memref<16x144xf32, #tpu.memory_space<vmem>>, vector<16x144xf32>
    %c0_6 = arith.constant 0 : index
    %c0_7 = arith.constant 0 : index
    %4 = vector.load %arg3[%c0_6, %c0_7] : memref<16x144xf32, #tpu.memory_space<vmem>>, vector<16x144xf32>
    %5 = tpu.concatenate %3, %4 in 0 : vector<16x144xf32>, vector<16x144xf32> -> vector<32x144xf32>
    %cst = arith.constant dense<0.000000e+00> : vector<32x768xf32>
    %6 = tpu.matmul %5, %1, %cst {dimension_numbers = #tpu.dot_dimension_numbers<[1], [0], [0], [1], [0, 0, 1, 1], [], []>} : vector<32x144xf32>, vector<144x768xf32>, vector<32x768xf32> -> vector<32x768xf32>
    %7 = vector.broadcast %2 : vector<1x768xf32> to vector<32x768xf32>
    %8 = arith.addf %6, %7 : vector<32x768xf32>
    %9 = math.tanh %8 : vector<32x768xf32>
    %10 = vector.extract_strided_slice %9 {offsets = [0, 0], sizes = [16, 768], strides = [1, 1]} : vector<32x768xf32> to vector<16x768xf32>
    %11 = vector.extract_strided_slice %9 {offsets = [16, 0], sizes = [16, 768], strides = [1, 1]} : vector<32x768xf32> to vector<16x768xf32>
    %12 = arith.subf %10, %11 : vector<16x768xf32>
    %13 = vector.broadcast %0 : f32 to vector<16x768xf32>
    %14 = arith.mulf %13, %12 : vector<16x768xf32>
    %15 = arith.addf %11, %14 : vector<16x768xf32>
    %c0_8 = arith.constant 0 : index
    %c0_9 = arith.constant 0 : index
    %16 = vector.load %arg6[%c0_8, %c0_9] : memref<768x128xf32, #tpu.memory_space<vmem>>, vector<768x128xf32>
    %cst_10 = arith.constant dense<0.000000e+00> : vector<16x128xf32>
    %17 = tpu.matmul %15, %16, %cst_10 {dimension_numbers = #tpu.dot_dimension_numbers<[1], [0], [0], [1], [0, 0, 1, 1], [], []>} : vector<16x768xf32>, vector<768x128xf32>, vector<16x128xf32> -> vector<16x128xf32>
    %c0_11 = arith.constant 0 : index
    %c0_12 = arith.constant 0 : index
    %18 = vector.load %arg7[%c0_11, %c0_12] : memref<1x128xf32, #tpu.memory_space<vmem>>, vector<1x128xf32>
    %19 = vector.broadcast %18 : vector<1x128xf32> to vector<16x128xf32>
    %20 = arith.addf %17, %19 : vector<16x128xf32>
    %cst_13 = arith.constant 0.000000e+00 : f32
    %21 = vector.broadcast %cst_13 : f32 to vector<16x128xf32>
    %22 = arith.maximumf %20, %21 : vector<16x128xf32>
    %c0_14 = arith.constant 0 : index
    %c0_15 = arith.constant 0 : index
    %23 = vector.load %arg8[%c0_14, %c0_15] : memref<128x128xf32, #tpu.memory_space<vmem>>, vector<128x128xf32>
    %cst_16 = arith.constant dense<0.000000e+00> : vector<16x128xf32>
    %24 = tpu.matmul %22, %23, %cst_16 {dimension_numbers = #tpu.dot_dimension_numbers<[1], [0], [0], [1], [0, 0, 1, 1], [], []>} : vector<16x128xf32>, vector<128x128xf32>, vector<16x128xf32> -> vector<16x128xf32>
    %c0_17 = arith.constant 0 : index
    %c0_18 = arith.constant 0 : index
    %25 = vector.load %arg9[%c0_17, %c0_18] : memref<1x128xf32, #tpu.memory_space<vmem>>, vector<1x128xf32>
    %26 = vector.broadcast %25 : vector<1x128xf32> to vector<16x128xf32>
    %27 = arith.addf %24, %26 : vector<16x128xf32>
    %c0_19 = arith.constant 0 : index
    %c0_20 = arith.constant 0 : index
    %28 = vector.load %arg10[%c0_19, %c0_20] : memref<16x128xf32, #tpu.memory_space<vmem>>, vector<16x128xf32>
    tpu.vector_store %arg10[%c0_19, %c0_20], %27 {strides = array<i32>} : memref<16x128xf32, #tpu.memory_space<vmem>>, vector<16x128xf32>,
    return
  }
  func.func @transform_0(%arg0: i32) -> i32 {
    %c0_i32 = arith.constant 0 : i32
    %c0_i32_0 = arith.constant 0 : i32
    return %c0_i32 : i32
  }
  func.func @transform_1(%arg0: i32) -> (i32, i32) {
    %c0_i32 = arith.constant 0 : i32
    %c0_i32_0 = arith.constant 0 : i32
    return %arg0, %c0_i32 : i32, i32
  }
  func.func @transform_2(%arg0: i32) -> (i32, i32) {
    %c0_i32 = arith.constant 0 : i32
    %c0_i32_0 = arith.constant 0 : i32
    return %arg0, %c0_i32 : i32, i32
  }
  func.func @transform_3(%arg0: i32) -> (i32, i32) {
    %c0_i32 = arith.constant 0 : i32
    %c0_i32_0 = arith.constant 0 : i32
    %c0_i32_1 = arith.constant 0 : i32
    return %c0_i32, %c0_i32_0 : i32, i32
  }
  func.func @transform_4(%arg0: i32) -> (i32, i32) {
    %c0_i32 = arith.constant 0 : i32
    %c0_i32_0 = arith.constant 0 : i32
    %c0_i32_1 = arith.constant 0 : i32
    return %c0_i32, %c0_i32_0 : i32, i32
  }
  func.func @transform_5(%arg0: i32) -> (i32, i32) {
    %c0_i32 = arith.constant 0 : i32
    %c0_i32_0 = arith.constant 0 : i32
    %c0_i32_1 = arith.constant 0 : i32
    return %c0_i32, %c0_i32_0 : i32, i32
  }
  func.func @transform_6(%arg0: i32) -> (i32, i32) {
    %c0_i32 = arith.constant 0 : i32
    %c0_i32_0 = arith.constant 0 : i32
    %c0_i32_1 = arith.constant 0 : i32
    return %c0_i32, %c0_i32_0 : i32, i32
  }
  func.func @transform_7(%arg0: i32) -> (i32, i32) {
    %c0_i32 = arith.constant 0 : i32
    %c0_i32_0 = arith.constant 0 : i32
    %c0_i32_1 = arith.constant 0 : i32
    return %c0_i32, %c0_i32_0 : i32, i32
  }
  func.func @transform_8(%arg0: i32) -> (i32, i32) {
    %c0_i32 = arith.constant 0 : i32
    %c0_i32_0 = arith.constant 0 : i32
    %c0_i32_1 = arith.constant 0 : i32
    return %c0_i32, %c0_i32_0 : i32, i32
  }
  func.func @transform_9(%arg0: i32) -> (i32, i32) {
    %c0_i32 = arith.constant 0 : i32
    %c0_i32_0 = arith.constant 0 : i32
    return %arg0, %c0_i32 : i32, i32
  }
}

</mosaic_0001>

<bundles_post_ra>
// kernel: tpu_custom_call.1
= control target key start
LH: loop header
LB: loop body
LE: loop exit
PB: predicated region body
PF: predicated region fallthrough
CT: control target
= control target key end

     0   :  { %15 = vsyncpa [#allocation4], 0  ;;  %s1524_s0 = inlined_call_operand.<no memory space> [shape: f32[1], index: 0, kind: input, shape index: {}]   ;;  %s1525_s1 = inlined_call_operand.hbm [shape: f32[16,144], index: 1, kind: input, shape index: {}]   ;;  %s1526_s2 = inlined_call_operand.hbm [shape: f32[16,144], index: 2, kind: input, shape index: {}]   ;;  %s1527_s3 = inlined_call_operand.hbm [shape: f32[144,768], index: 3, kind: input, shape index: {}]   ;;  %s1528_s4 = inlined_call_operand.hbm [shape: f32[1,768], index: 4, kind: input, shape index: {}]   ;;  %s1529_s5 = inlined_call_operand.hbm [shape: f32[768,128], index: 5, kind: input, shape index: {}]   ;;  %s1530_s6 = inlined_call_operand.vmem [shape: f32[1,128], index: 6, kind: input, shape index: {}]   ;;  %s1531_s7 = inlined_call_operand.hbm [shape: f32[128,128], index: 7, kind: input, shape index: {}]   ;;  %s1532_s8 = inlined_call_operand.vmem [shape: f32[1,128], index: 8, kind: input, shape index: {}]   ;;  %s1533_s9 = inlined_call_operand.hbm [shape: f32[16,128], index: 9, kind: output, shape index: {}]  }
   0x1   :  { %16 = vsyncpa [#allocation7], 0 }
   0x2   :  { %17 = vsyncpa [#allocation10], 0 }
   0x3   :  { %18 = vsyncpa [#allocation13], 0 }
   0x4   :  { %19 = vsyncpa [#allocation5], 0  ;;  %s39_s11 = sshll.u32 %s1526_s2, 4  ;;  %s1267_s12 = smov [#allocation6]   ;;  %s40_s11 = int_to_ptr.hbm [resolvable:$true] %s39_s11 }
   0x5   :  { %s41_s13 = sshll.u32 %s1267_s12, 4  ;;  %s66_s16 = sshll.u32 %s1528_s4, 4  ;;  %s42_s13 = int_to_ptr.vmem [resolvable:$true] %s41_s13  ;;  %s67_s16 = int_to_ptr.hbm [resolvable:$true] %s66_s16 }
   0x6   :  { %s1268_s17 = smov 256   ;;  %s1269_s18 = smov 16  }
   0x7   :  { %47 = dma.hbm_to_vmem [thread:$0]  %s40_s11, 512, %s42_s13, [#allocation7], %s1268_s17, %s1268_s17, %s1269_s18  }
   0x8   :  { %s1270_s19 = smov [#allocation9]   ;;  %s26_s23 = sshll.u32 %s1525_s1, 4  ;;  %s27_s23 = int_to_ptr.hbm [resolvable:$true] %s26_s23 }
   0x9   :  { %s68_s20 = sshll.u32 %s1270_s19, 4  ;;  %s52_s25 = sshll.u32 %s1527_s3, 4  ;;  %s69_s20 = int_to_ptr.vmem [resolvable:$true] %s68_s20  ;;  %s53_s25 = int_to_ptr.hbm [resolvable:$true] %s52_s25 }
   0xa   :  { %71 = dma.hbm_to_vmem [thread:$0]  %s67_s16, 96, %s69_s20, [#allocation10]  }
   0xb   :  { %s1271_s26 = smov [#allocation3]   ;;  %s1272_s4 = smov [#allocation8]  }
   0xc   :  { %s28_s27 = sshll.u32 %s1271_s26, 4  ;;  %s54_s28 = sshll.u32 %s1272_s4, 4  ;;  %s29_s27 = int_to_ptr.vmem [resolvable:$true] %s28_s27  ;;  %s55_s28 = int_to_ptr.vmem [resolvable:$true] %s54_s28 }
   0xd   :  { %34 = dma.hbm_to_vmem [thread:$0]  %s27_s23, 512, %s29_s27, [#allocation4], %s1268_s17, %s1268_s17, %s1269_s18  }
   0xe   :  { %s1273_s29 = smov 768   ;;  %s1274_s30 = smov 48  }
   0xf   :  { %60 = dma.hbm_to_vmem [thread:$0]  %s53_s25, 13824, %s55_s28, [#allocation7], %s1273_s29, %s1273_s29, %s1274_s30  }
  0x10   :  { %s76_s11 = sshll.u32 %s1529_s5, 4  ;;  %s1275_s12 = smov [#allocation11]   ;;  %s77_s11 = int_to_ptr.hbm [resolvable:$true] %s76_s11 }
  0x11   :  { %s78_s13 = sshll.u32 %s1275_s12, 4  ;;  %s91_s15 = sshll.u32 %s1531_s7, 4  ;;  %s79_s13 = int_to_ptr.vmem [resolvable:$true] %s78_s13  ;;  %s92_s15 = int_to_ptr.hbm [resolvable:$true] %s91_s15 }
  0x12   :  { %s1276_s16 = smov 128   ;;  %s1277_s17 = smov 8  }
  0x13   :  { %84 = dma.hbm_to_vmem [thread:$0]  %s77_s11, 12288, %s79_s13, [#allocation10], %s1276_s16, %s1276_s16, %s1277_s17  }
  0x14   :  { %s1278_s18 = smov [#allocation12]  }
  0x15   :  { %s93_s19 = sshll.u32 %s1278_s18, 4  ;;  %s94_s19 = int_to_ptr.vmem [resolvable:$true] %s93_s19 }
  0x16   :  { %99 = dma.hbm_to_vmem [thread:$0]  %s92_s15, 2048, %s94_s19, [#allocation13], %s1276_s16, %s1276_s16, %s1277_s17  }
  0x17   :  { %1257 = dma.done.wait [#allocation4], 512  }
  0x18   :  { %1258 = vsyncadd [#allocation4], 4294966784 }
  0x19   :  { %1259 = dma.done.wait [#allocation7], 14336  }
  0x1a   :  { %1260 = vsyncadd [#allocation7], 4294952960 }
  0x1b   :  { %1261 = dma.done.wait [#allocation10], 12384  }
  0x1c   :  { %1262 = vsyncadd [#allocation10], 4294954912 }
  0x1d   :  { %1263 = dma.done.wait [#allocation13], 2048  }
  0x1e   :  { %1264 = vsyncadd [#allocation13], 4294965248  ;;  %v217_v0 = vld [vmem:[#allocation8 + $0x2d0] sm:$0xff]  ;;  %v218_v1 = vld [vmem:[#allocation8 + $0x2d8] sm:$0xff]  ;;  %vm257_vm0 = vcmask 130048   ;;  %s1279_s22 = smov [#allocation14]  }
  0x1f   :  { %v211_v2 = vld [vmem:[#allocation8 + $0x2a0] sm:$0xff]  ;;  %270 = vmatpush.msra.mxu0 %v217_v0  ;;  %328 = vmatpush.msra.mxu2 %v218_v1  ;;  %v212_v3 = vld [vmem:[#allocation8 + $0x2a8] sm:$0xff]  ;;  %v205_v4 = vld [vmem:[#allocation8 + $0x270] sm:$0xff]  ;;  %s968_s23 = sshll.u32 %s1279_s22, 4  ;;  %s970_s25 = sshll.u32 %s1533_s9, 4  ;;  %s969_s23 = int_to_ptr.vmem [resolvable:$true] %s968_s23  ;;  %s971_s25 = int_to_ptr.hbm [resolvable:$true] %s970_s25 }
  0x20   :  { %v206_v5 = vld [vmem:[#allocation8 + $0x278] sm:$0xff]  ;;  %v224_v7 = vld [vmem:[#allocation8 + $0x308] sm:$0xff]  ;;  %v199_v8 = vld [vmem:[#allocation8 + $0x240] sm:$0xff] }
  0x21   :  { %v230_v6 = vld [vmem:[#allocation8 + $0x338] sm:$0xff]  ;;  %271 = vmatpush.msra.mxu0 %v211_v2  ;;  %329 = vmatpush.msra.mxu2 %v212_v3  ;;  %v200_v9 = vld [vmem:[#allocation8 + $0x248] sm:$0xff]  ;;  %v229_v10 = vld [vmem:[#allocation8 + $0x330] sm:$0xff] }
  0x22   :  { %371 = vmatpush.msra.mxu3 %v230_v6  ;;  %v1354_v11 = vld [vmem:[#allocation3 + $0x8] sm:$0xff]  ;;  %v223_v12 = vld [vmem:[#allocation8 + $0x300] sm:$0xff]  ;;  %v193_v13 = vld [vmem:[#allocation8 + $0x210] sm:$0xff]  ;;  %313 = vmatpush.msra.mxu1 %v229_v10 }
  0x23   :  { %272 = vmatpush.msra.mxu0 %v205_v4  ;;  %330 = vmatpush.msra.mxu2 %v206_v5  ;;  %v194_v14 = vld [vmem:[#allocation8 + $0x218] sm:$0xff]  ;;  %v187_v15 = vld [vmem:[#allocation8 + $0x1e0] sm:$0xff]  ;;  %v188_v16 = vld [vmem:[#allocation8 + $0x1e8] sm:$0xff] }
  0x24   :  { %372 = vmatpush.msra.mxu3 %v224_v7  ;;  %314 = vmatpush.msra.mxu1 %v223_v12  ;;  %v219_v17 = vld [vmem:[#allocation8 + $0x2e0] sm:$0xff]  ;;  %v181_v18 = vld [vmem:[#allocation8 + $0x1b0] sm:$0xff]  ;;  %v182_v19 = vld [vmem:[#allocation8 + $0x1b8] sm:$0xff] }
  0x25   :  { %273 = vmatpush.msra.mxu0 %v199_v8  ;;  %331 = vmatpush.msra.mxu2 %v200_v9  ;;  %v213_v20 = vld [vmem:[#allocation8 + $0x2b0] sm:$0xff]  ;;  %v175_v21 = vld [vmem:[#allocation8 + $0x180] sm:$0xff]  ;;  %v176_v22 = vld [vmem:[#allocation8 + $0x188] sm:$0xff] }
  0x26   :  { %990 = vmatmul.msk.f32.vlgmr.msra.gmra.mxu3 %vm257_vm0, %v1354_v11  ;;  %986 = vmatmul.msk.f32.vlgmr.msra.gmra.mxu1 %vm257_vm0, %v1354_v11  ;;  %v1360_v23 = vld [vmem:[#allocation3 + $0x18] sm:$0xff]  ;;  %v207_v24 = vld [vmem:[#allocation8 + $0x280] sm:$0xff]  ;;  %v169_v25 = vld [vmem:[#allocation8 + $0x150] sm:$0xff] }
  0x27   :  { %274 = vmatpush.msra.mxu0 %v193_v13  ;;  %332 = vmatpush.msra.mxu2 %v194_v14  ;;  %v170_v26 = vld [vmem:[#allocation8 + $0x158] sm:$0xff]  ;;  %v201_v27 = vld [vmem:[#allocation8 + $0x250] sm:$0xff]  ;;  %v163_v28 = vld [vmem:[#allocation8 + $0x120] sm:$0xff] }
  0x28   :  { %386 = vmatpush.msrb.mxu1 %v219_v17  ;;  %v164_v29 = vld [vmem:[#allocation8 + $0x128] sm:$0xff]  ;;  %v157_v30 = vld [vmem:[#allocation8 + $0xf0] sm:$0xff]  ;;  %v158_v31 = vld [vmem:[#allocation8 + $0xf8] sm:$0xff] }
  0x29   :  { %275 = vmatpush.msra.mxu0 %v187_v15  ;;  %333 = vmatpush.msra.mxu2 %v188_v16  ;;  %v231_v32 = vld [vmem:[#allocation8 + $0x340] sm:$0xff]  ;;  %v225_v34 = vld [vmem:[#allocation8 + $0x310] sm:$0xff]  ;;  %v152_v36 = vld [vmem:[#allocation8 + $0xc8] sm:$0xff] }
  0x2a   :  { %387 = vmatpush.msrb.mxu1 %v213_v20  ;;  %v195_v33 = vld [vmem:[#allocation8 + $0x220] sm:$0xff]  ;;  %429 = vmatpush.msrb.mxu3 %v231_v32  ;;  %v189_v37 = vld [vmem:[#allocation8 + $0x1f0] sm:$0xff]  ;;  %v1366_v38 = vld [vmem:[#allocation6 + $0x8] sm:$0xff] }
  0x2b   :  { %276 = vmatpush.msra.mxu0 %v181_v18  ;;  %334 = vmatpush.msra.mxu2 %v182_v19  ;;  %v151_v35 = vld [vmem:[#allocation8 + $0xc0] sm:$0xff]  ;;  %v145_v39 = vld [vmem:[#allocation8 + $0x90] sm:$0xff]  ;;  %v146_v40 = vld [vmem:[#allocation8 + $0x98] sm:$0xff] }
  0x2c   :  { %388 = vmatpush.msrb.mxu1 %v207_v24  ;;  %430 = vmatpush.msrb.mxu3 %v225_v34  ;;  %v183_v41 = vld [vmem:[#allocation8 + $0x1c0] sm:$0xff]  ;;  %v140_v43 = vld [vmem:[#allocation8 + $0x68] sm:$0xff]  ;;  %v177_v44 = vld [vmem:[#allocation8 + $0x190] sm:$0xff] }
  0x2d   :  { %277 = vmatpush.msra.mxu0 %v175_v21  ;;  %335 = vmatpush.msra.mxu2 %v176_v22  ;;  %v139_v42 = vld [vmem:[#allocation8 + $0x60] sm:$0xff]  ;;  %v133_v45 = vld [vmem:[#allocation8 + $0x30] sm:$0xff]  ;;  %v134_v46 = vld [vmem:[#allocation8 + $0x38] sm:$0xff] }
  0x2e   :  { %991 = vmatmul.msk.f32.gmra.mxu3 %vm257_vm0, %v1360_v23  ;;  %389 = vmatpush.msrb.mxu1 %v201_v27  ;;  %v171_v47 = vld [vmem:[#allocation8 + $0x160] sm:$0xff]  ;;  %v128_v49 = vld [vmem:[#allocation8 + $0x8] sm:$0xff]  ;;  %v165_v50 = vld [vmem:[#allocation8 + $0x130] sm:$0xff] }
  0x2f   :  { %278 = vmatpush.msra.mxu0 %v169_v25  ;;  %336 = vmatpush.msra.mxu2 %v170_v26  ;;  %v127_v48 = vld [vmem:[#allocation8] sm:$0xff]  ;;  %v1374_v52 = vld [vmem:[#allocation6 + $0x18] sm:$0xff]  ;;  %v232_v53 = vld [vmem:[#allocation8 + $0x348] sm:$0xff] }
  0x30   :  { %987 = vmatmul.msk.f32.gmra.mxu1 %vm257_vm0, %v1360_v23  ;;  %v1372_v51 = vld [vmem:[#allocation3] sm:$0xff]  ;;  %v220_v55 = vld [vmem:[#allocation8 + $0x2e8] sm:$0xff]  ;;  %v226_v56 = vld [vmem:[#allocation8 + $0x318] sm:$0xff] }
  0x31   :  { %279 = vmatpush.msra.mxu0 %v163_v28  ;;  %337 = vmatpush.msra.mxu2 %v164_v29  ;;  %v159_v54 = vld [vmem:[#allocation8 + $0x100] sm:$0xff]  ;;  %v153_v57 = vld [vmem:[#allocation8 + $0xd0] sm:$0xff]  ;;  %v214_v58 = vld [vmem:[#allocation8 + $0x2b8] sm:$0xff] }
  0x32   :  { %390 = vmatpush.msrb.mxu1 %v195_v33  ;;  %v234_v59 = vld [vmem:[#allocation8 + $0x358] sm:$0xff]  ;;  %v147_v60 = vld [vmem:[#allocation8 + $0xa0] sm:$0xff]  ;;  %v208_v61 = vld [vmem:[#allocation8 + $0x288] sm:$0xff] }
  0x33   :  { %280 = vmatpush.msra.mxu0 %v157_v30  ;;  %338 = vmatpush.msra.mxu2 %v158_v31  ;;  %v141_v62 = vld [vmem:[#allocation8 + $0x70] sm:$0xff]  ;;  %v135_v1 = vld [vmem:[#allocation8 + $0x40] sm:$0xff]  ;;  %v202_v2 = vld [vmem:[#allocation8 + $0x258] sm:$0xff] }
  0x34   :  { %391 = vmatpush.msrb.mxu1 %v189_v37  ;;  %v1382_v63 = vld [vmem:[#allocation3 + $0x10] sm:$0xff]  ;;  %v227_v3 = vld [vmem:[#allocation8 + $0x320] sm:$0xff]  ;;  %v196_v5 = vld [vmem:[#allocation8 + $0x228] sm:$0xff] }
  0x35   :  { %281 = vmatpush.msra.mxu0 %v151_v35  ;;  %339 = vmatpush.msra.mxu2 %v152_v36  ;;  %v233_v0 = vld [vmem:[#allocation8 + $0x350] sm:$0xff]  ;;  %v190_v7 = vld [vmem:[#allocation8 + $0x1f8] sm:$0xff]  ;;  %v215_v8 = vld [vmem:[#allocation8 + $0x2c0] sm:$0xff] }
  0x36   :  { %992 = vmatmul.msk.f32.gmra.mxu3 %vm257_vm0, %v1366_v38  ;;  %392 = vmatpush.msrb.mxu1 %v183_v41  ;;  %v129_v4 = vld [vmem:[#allocation8 + $0x10] sm:$0xff]  ;;  %v1389_v9 = vld [vmem:[#allocation6] sm:$0xff]  ;;  %v184_v10 = vld [vmem:[#allocation8 + $0x1c8] sm:$0xff] }
  0x37   :  { %282 = vmatpush.msra.mxu0 %v145_v39  ;;  %340 = vmatpush.msra.mxu2 %v146_v40  ;;  %v221_v6 = vld [vmem:[#allocation8 + $0x2f0] sm:$0xff]  ;;  %v178_v13 = vld [vmem:[#allocation8 + $0x198] sm:$0xff]  ;;  %v203_v14 = vld [vmem:[#allocation8 + $0x260] sm:$0xff] }
  0x38   :  { %393 = vmatpush.msrb.mxu1 %v177_v44  ;;  %545 = vmatpush.msra.mxu3 %v233_v0  ;;  %v209_v12 = vld [vmem:[#allocation8 + $0x290] sm:$0xff]  ;;  %v228_v15 = vld [vmem:[#allocation8 + $0x328] sm:$0xff]  ;;  %v166_v18 = vld [vmem:[#allocation8 + $0x138] sm:$0xff] }
  0x39   :  { %283 = vmatpush.msra.mxu0 %v139_v42  ;;  %341 = vmatpush.msra.mxu2 %v140_v43  ;;  %v172_v16 = vld [vmem:[#allocation8 + $0x168] sm:$0xff]  ;;  %v197_v17 = vld [vmem:[#allocation8 + $0x230] sm:$0xff]  ;;  %v191_v19 = vld [vmem:[#allocation8 + $0x200] sm:$0xff] }
  0x3a   :  { %988 = vmatmul.msk.f32.gmra.mxu1 %vm257_vm0, %v1366_v38  ;;  %546 = vmatpush.msra.mxu3 %v227_v3  ;;  %v1396_v20 = vld [vmem:[#allocation6 + $0x10] sm:$0xff]  ;;  %v160_v21 = vld [vmem:[#allocation8 + $0x108] sm:$0xff]  ;;  %v154_v24 = vld [vmem:[#allocation8 + $0xd8] sm:$0xff] }
  0x3b   :  { %284 = vmatpush.msra.mxu0 %v133_v45  ;;  %342 = vmatpush.msra.mxu2 %v134_v46  ;;  %v185_v22 = vld [vmem:[#allocation8 + $0x1d0] sm:$0xff]  ;;  %v179_v25 = vld [vmem:[#allocation8 + $0x1a0] sm:$0xff]  ;;  %v148_v26 = vld [vmem:[#allocation8 + $0xa8] sm:$0xff] }
  0x3c   :  { %394 = vmatpush.msrb.mxu1 %v171_v47  ;;  %v173_v27 = vld [vmem:[#allocation8 + $0x170] sm:$0xff]  ;;  %v142_v28 = vld [vmem:[#allocation8 + $0x78] sm:$0xff]  ;;  %v167_v29 = vld [vmem:[#allocation8 + $0x140] sm:$0xff] }
  0x3d   :  { %285 = vmatpush.msra.mxu0 %v127_v48  ;;  %343 = vmatpush.msra.mxu2 %v128_v49  ;;  %v136_v30 = vld [vmem:[#allocation8 + $0x48] sm:$0xff]  ;;  %v161_v31 = vld [vmem:[#allocation8 + $0x110] sm:$0xff]  ;;  %v130_v32 = vld [vmem:[#allocation8 + $0x18] sm:$0xff] }
  0x3e   :  { %395 = vmatpush.msrb.mxu1 %v165_v50  ;;  %286 = vmatmul.f32.vlgmr.msra.gmra.mxu0 %v1372_v51  ;;  %v155_v33 = vld [vmem:[#allocation8 + $0xe0] sm:$0xff]  ;;  %v222_v34 = vld [vmem:[#allocation8 + $0x2f8] sm:$0xff]  ;;  %v149_v35 = vld [vmem:[#allocation8 + $0xb0] sm:$0xff] }
  0x3f   :  { %344 = vmatmul.f32.vlgmr.msra.gmra.mxu2 %v1372_v51  ;;  %993 = vmatmul.msk.f32.gmra.mxu3 %vm257_vm0, %v1374_v52  ;;  %v216_v36 = vld [vmem:[#allocation8 + $0x2c8] sm:$0xff]  ;;  %v143_v37 = vld [vmem:[#allocation8 + $0x80] sm:$0xff]  ;;  %v210_v39 = vld [vmem:[#allocation8 + $0x298] sm:$0xff] }
  0x40   :  { %487 = vmatpush.msrb.mxu2 %v232_v53  ;;  %396 = vmatpush.msrb.mxu1 %v159_v54  ;;  %v137_v40 = vld [vmem:[#allocation8 + $0x50] sm:$0xff]  ;;  %v204_v41 = vld [vmem:[#allocation8 + $0x268] sm:$0xff]  ;;  %v131_v42 = vld [vmem:[#allocation8 + $0x20] sm:$0xff] }
  0x41   :  { %444 = vmatpush.msrb.mxu0 %v220_v55  ;;  %v198_v43 = vld [vmem:[#allocation8 + $0x238] sm:$0xff]  ;;  %v192_v44 = vld [vmem:[#allocation8 + $0x208] sm:$0xff] }
  0x42   :  { %488 = vmatpush.msrb.mxu2 %v226_v56  ;;  %397 = vmatpush.msrb.mxu1 %v153_v57  ;;  %v186_v45 = vld [vmem:[#allocation8 + $0x1d8] sm:$0xff]  ;;  %v180_v46 = vld [vmem:[#allocation8 + $0x1a8] sm:$0xff] }
  0x43   :  { %445 = vmatpush.msrb.mxu0 %v214_v58  ;;  %989 = vmatmul.msk.f32.gmra.mxu1 %vm257_vm0, %v1374_v52  ;;  %v174_v47 = vld [vmem:[#allocation8 + $0x178] sm:$0xff]  ;;  %v168_v48 = vld [vmem:[#allocation8 + $0x148] sm:$0xff] }
  0x44   :  { %603 = vmatpush.msra.mxu2 %v234_v59  ;;  %398 = vmatpush.msrb.mxu1 %v147_v60  ;;  %v162_v49 = vld [vmem:[#allocation8 + $0x118] sm:$0xff]  ;;  %v156_v50 = vld [vmem:[#allocation8 + $0xe8] sm:$0xff] }
  0x45   :  { %446 = vmatpush.msrb.mxu0 %v208_v61  ;;  %v150_v53 = vld [vmem:[#allocation8 + $0xb8] sm:$0xff]  ;;  %v144_v54 = vld [vmem:[#allocation8 + $0x88] sm:$0xff] }
  0x46   :  { %399 = vmatpush.msrb.mxu1 %v141_v62  ;;  %289 = vmatmul.f32.gmra.mxu0 %v1382_v63  ;;  %v138_v55 = vld [vmem:[#allocation8 + $0x58] sm:$0xff]  ;;  %v132_v56 = vld [vmem:[#allocation8 + $0x28] sm:$0xff] }
  0x47   :  { %347 = vmatmul.f32.gmra.mxu2 %v1382_v63  ;;  %994 = vmatmul.msk.f32.vlgmr.msrb.gmra.mxu3 %vm257_vm0, %v1354_v11  ;;  %v692_v57 = vld [vmem:[#allocation11 + $0x68] sm:$0xff]  ;;  %v710_v59 = vld [vmem:[#allocation11 + $0xf8] sm:$0xff]  ;;  %v709_v60 = vld [vmem:[#allocation11 + $0xf0] sm:$0xff] }
  0x48   :  { %400 = vmatpush.msrb.mxu1 %v135_v1  ;;  %447 = vmatpush.msrb.mxu0 %v202_v2  ;;  %v708_v62 = vld [vmem:[#allocation11 + $0xe8] sm:$0xff]  ;;  %v707_v0 = vld [vmem:[#allocation11 + $0xe0] sm:$0xff]  ;;  %v706_v2 = vld [vmem:[#allocation11 + $0xd8] sm:$0xff] }
  0x49   :  { %604 = vmatpush.msra.mxu2 %v228_v15  ;;  %802 = vmatpush.msrb.mxu3 %v710_v59  ;;  %v687_v1 = vld [vmem:[#allocation11 + $0x40] sm:$0xff]  ;;  %v726_v3 = vld [vmem:[#allocation11 + $0x178] sm:$0xff] }
  0x4a   :  { %401 = vmatpush.msrb.mxu1 %v129_v4  ;;  %448 = vmatpush.msrb.mxu0 %v196_v5  ;;  %v686_v5 = vld [vmem:[#allocation11 + $0x38] sm:$0xff]  ;;  %v723_v15 = vld [vmem:[#allocation11 + $0x160] sm:$0xff] }
  0x4b   :  { %402 = vmatmul.f32.vlgmr.msrb.gmra.mxu1 %v1372_v51  ;;  %803 = vmatpush.msrb.mxu3 %v709_v60 }
  0x4c   :  { %502 = vmatpush.msra.mxu1 %v221_v6  ;;  %449 = vmatpush.msrb.mxu0 %v190_v7  ;;  %v705_v6 = vld [vmem:[#allocation11 + $0xd0] sm:$0xff] }
  0x4d   :  { %804 = vmatpush.msrb.mxu3 %v708_v62  ;;  %v725_v7 = vld [vmem:[#allocation11 + $0x170] sm:$0xff]  ;;  %v738_v62 = vld [vmem:[#allocation11 + $0x1d8] sm:$0xff] }
  0x4e   :  { %503 = vmatpush.msra.mxu1 %v215_v8  ;;  %292 = vmatmul.f32.gmra.mxu0 %v1389_v9 }
  0x4f   :  { %350 = vmatmul.f32.gmra.mxu2 %v1389_v9  ;;  %995 = vmatmul.msk.f32.gmra.mxu3 %vm257_vm0, %v1360_v23 }
  0x50   :  { %450 = vmatpush.msrb.mxu0 %v184_v10  ;;  %504 = vmatpush.msra.mxu1 %v209_v12  ;;  %v704_v10 = vld [vmem:[#allocation11 + $0xc8] sm:$0xff] }
  0x51   :  { %805 = vmatpush.msrb.mxu3 %v707_v0  ;;  %v724_v12 = vld [vmem:[#allocation11 + $0x168] sm:$0xff] }
  0x52   :  { %451 = vmatpush.msrb.mxu0 %v178_v13  ;;  %505 = vmatpush.msra.mxu1 %v203_v14  ;;  %v684_v13 = vld [vmem:[#allocation11 + $0x28] sm:$0xff]  ;;  %v703_v14 = vld [vmem:[#allocation11 + $0xc0] sm:$0xff] }
  0x53   :  { %405 = vmatmul.f32.gmra.mxu1 %v1382_v63  ;;  %806 = vmatpush.msrb.mxu3 %v706_v2  ;;  %v757_v2 = vld [vmem:[#allocation11 + $0x270] sm:$0xff] }
  0x54   :  { %452 = vmatpush.msrb.mxu0 %v172_v16  ;;  %506 = vmatpush.msra.mxu1 %v197_v17  ;;  %v683_v16 = vld [vmem:[#allocation11 + $0x20] sm:$0xff]  ;;  %v702_v17 = vld [vmem:[#allocation11 + $0xb8] sm:$0xff] }
  0x55   :  { %807 = vmatpush.msrb.mxu3 %v705_v6  ;;  %v736_v6 = vld [vmem:[#allocation11 + $0x1c8] sm:$0xff] }
  0x56   :  { %453 = vmatpush.msrb.mxu0 %v166_v18  ;;  %507 = vmatpush.msra.mxu1 %v191_v19  ;;  %v722_v18 = vld [vmem:[#allocation11 + $0x158] sm:$0xff] }
  0x57   :  { %295 = vmatmul.f32.gmra.mxu0 %v1396_v20  ;;  %353 = vmatmul.f32.gmra.mxu2 %v1396_v20 }
  0x58   :  { %996 = vmatmul.msk.f32.gmra.mxu3 %vm257_vm0, %v1366_v38  ;;  %454 = vmatpush.msrb.mxu0 %v160_v21  ;;  %v701_v21 = vld [vmem:[#allocation11 + $0xb0] sm:$0xff] }
  0x59   :  { %508 = vmatpush.msra.mxu1 %v185_v22  ;;  %808 = vmatpush.msrb.mxu3 %v704_v10  ;;  %v721_v22 = vld [vmem:[#allocation11 + $0x150] sm:$0xff] }
  0x5a   :  { %455 = vmatpush.msrb.mxu0 %v154_v24 }
  0x5b   :  { %509 = vmatpush.msra.mxu1 %v179_v25  ;;  %809 = vmatpush.msrb.mxu3 %v703_v14  ;;  %v681_v25 = vld [vmem:[#allocation11 + $0x10] sm:$0xff] }
  0x5c   :  { %408 = vmatmul.f32.gmra.mxu1 %v1389_v9  ;;  %456 = vmatpush.msrb.mxu0 %v148_v26  ;;  %v700_v26 = vld [vmem:[#allocation11 + $0xa8] sm:$0xff] }
  0x5d   :  { %510 = vmatpush.msra.mxu1 %v173_v27  ;;  %810 = vmatpush.msrb.mxu3 %v702_v17  ;;  %v720_v27 = vld [vmem:[#allocation11 + $0x148] sm:$0xff] }
  0x5e   :  { %457 = vmatpush.msrb.mxu0 %v142_v28 }
  0x5f   :  { %511 = vmatpush.msra.mxu1 %v167_v29  ;;  %998 = vmatmul.msk.f32.vlgmr.msrb.gmra.mxu2 %vm257_vm0, %v1354_v11  ;;  %v680_v29 = vld [vmem:[#allocation11 + $0x8] sm:$0xff] }
  0x60   :  { %997 = vmatmul.msk.f32.gmra.mxu3 %vm257_vm0, %v1374_v52  ;;  %458 = vmatpush.msrb.mxu0 %v136_v30  ;;  %v699_v30 = vld [vmem:[#allocation11 + $0xa0] sm:$0xff] }
  0x61   :  { %512 = vmatpush.msra.mxu1 %v161_v31  ;;  %811 = vmatpush.msrb.mxu3 %v701_v21  ;;  %v719_v31 = vld [vmem:[#allocation11 + $0x140] sm:$0xff] }
  0x62   :  { %459 = vmatpush.msrb.mxu0 %v130_v32  ;;  %v679_v32 = vld [vmem:[#allocation11] sm:$0xff] }
  0x63   :  { %513 = vmatpush.msra.mxu1 %v155_v33  ;;  %460 = vmatmul.f32.vlgmr.msrb.gmra.mxu0 %v1372_v51  ;;  %v698_v33 = vld [vmem:[#allocation11 + $0x98] sm:$0xff] }
  0x64   :  { %411 = vmatmul.f32.gmra.mxu1 %v1396_v20  ;;  %560 = vmatpush.msra.mxu0 %v222_v34  ;;  %v718_v34 = vld [vmem:[#allocation11 + $0x138] sm:$0xff] }
  0x65   :  { %514 = vmatpush.msra.mxu1 %v149_v35  ;;  %812 = vmatpush.msrb.mxu3 %v700_v26  ;;  %v697_v35 = vld [vmem:[#allocation11 + $0x90] sm:$0xff] }
  0x66   :  { %561 = vmatpush.msra.mxu0 %v216_v36  ;;  %v717_v36 = vld [vmem:[#allocation11 + $0x130] sm:$0xff] }
  0x67   :  { %515 = vmatpush.msra.mxu1 %v143_v37  ;;  %999 = vmatmul.msk.f32.gmra.mxu2 %vm257_vm0, %v1360_v23  ;;  %v1454_v37 = vld [vmem:[#allocation9] sm:$0x3f] }
  0x68   :  { %1002 = vmatmul.msk.f32.vlgmr.msra.gmra.mxu3 %vm257_vm0, %v1354_v11  ;;  %562 = vmatpush.msra.mxu0 %v210_v39 }
  0x69   :  { %516 = vmatpush.msra.mxu1 %v137_v40  ;;  %813 = vmatpush.msrb.mxu3 %v699_v30 }
  0x6a   :  { %563 = vmatpush.msra.mxu0 %v204_v41  ;;  %v696_v41 = vld [vmem:[#allocation11 + $0x88] sm:$0xff] }
  0x6b   :  { %517 = vmatpush.msra.mxu1 %v131_v42  ;;  %463 = vmatmul.f32.gmra.mxu0 %v1382_v63  ;;  %v716_v42 = vld [vmem:[#allocation11 + $0x128] sm:$0xff] }
  0x6c   :  { %518 = vmatmul.f32.vlgmr.msra.gmra.mxu1 %v1372_v51  ;;  %564 = vmatpush.msra.mxu0 %v198_v43 }
  0x6d   :  { %814 = vmatpush.msrb.mxu3 %v698_v33  ;;  %v732_v33 = vld [vmem:[#allocation11 + $0x1a8] sm:$0xff] }
  0x6e   :  { %565 = vmatpush.msra.mxu0 %v192_v44  ;;  %v1461_v44 = vperm.slane %v1454_v37, 0 }
  0x6f   :  { %1000 = vmatmul.msk.f32.gmra.mxu2 %vm257_vm0, %v1366_v38  ;;  %815 = vmatpush.msrb.mxu3 %v697_v35 }
  0x70   :  { %1003 = vmatmul.msk.f32.gmra.mxu3 %vm257_vm0, %v1360_v23  ;;  %566 = vmatpush.msra.mxu0 %v186_v45 }
  0x71   :  { %816 = vmatpush.msrb.mxu3 %v696_v41  ;;  %v731_v41 = vld [vmem:[#allocation11 + $0x1a0] sm:$0xff] }
  0x72   :  { %567 = vmatpush.msra.mxu0 %v180_v46  ;;  %v695_v46 = vld [vmem:[#allocation11 + $0x80] sm:$0xff] }
  0x73   :  { %466 = vmatmul.f32.gmra.mxu0 %v1389_v9  ;;  %817 = vmatpush.msrb.mxu3 %v695_v46 }
  0x74   :  { %521 = vmatmul.f32.gmra.mxu1 %v1382_v63  ;;  %568 = vmatpush.msra.mxu0 %v174_v47  ;;  %v715_v47 = vld [vmem:[#allocation11 + $0x120] sm:$0xff] }
  0x76   :  { %569 = vmatpush.msra.mxu0 %v168_v48  ;;  %v742_v48 = vld [vmem:[#allocation11 + $0x1f8] sm:$0xff] }
  0x77   :  { %1001 = vmatmul.msk.f32.gmra.mxu2 %vm257_vm0, %v1374_v52 }
  0x78   :  { %1004 = vmatmul.msk.f32.gmra.mxu3 %vm257_vm0, %v1366_v38  ;;  %570 = vmatpush.msra.mxu0 %v162_v49  ;;  %v714_v49 = vld [vmem:[#allocation11 + $0x118] sm:$0xff] }
  0x79   :  { %848 = vmatpush.msrb.mxu2 %v742_v48  ;;  %v730_v48 = vld [vmem:[#allocation11 + $0x198] sm:$0xff] }
  0x7a   :  { %571 = vmatpush.msra.mxu0 %v156_v50  ;;  %v741_v50 = vld [vmem:[#allocation11 + $0x1f0] sm:$0xff] }
  0x7b   :  { %469 = vmatmul.f32.gmra.mxu0 %v1396_v20  ;;  %849 = vmatpush.msrb.mxu2 %v741_v50 }
  0x7c   :  { %524 = vmatmul.f32.gmra.mxu1 %v1389_v9  ;;  %572 = vmatpush.msra.mxu0 %v150_v53  ;;  %v713_v53 = vld [vmem:[#allocation11 + $0x110] sm:$0xff] }
  0x7e   :  { %573 = vmatpush.msra.mxu0 %v144_v54  ;;  %v740_v54 = vld [vmem:[#allocation11 + $0x1e8] sm:$0xff] }
  0x7f   :  { %1006 = vmatmul.msk.f32.vlgmr.msra.gmra.mxu2 %vm257_vm0, %v1354_v11  ;;  %v694_v11 = vld [vmem:[#allocation11 + $0x78] sm:$0xff] }
  0x80   :  { %1005 = vmatmul.msk.f32.gmra.mxu3 %vm257_vm0, %v1374_v52  ;;  %574 = vmatpush.msra.mxu0 %v138_v55 }
  0x81   :  { %779 = vmatpush.msrb.mxu1 %v694_v11  ;;  %850 = vmatpush.msrb.mxu2 %v740_v54  ;;  %v712_v11 = vld [vmem:[#allocation11 + $0x108] sm:$0xff] }
  0x82   :  { %575 = vmatpush.msra.mxu0 %v132_v56 }
  0x83   :  { %576 = vmatmul.f32.vlgmr.msra.gmra.mxu0 %v1372_v51  ;;  %v693_v51 = vld [vmem:[#allocation11 + $0x70] sm:$0xff] }
  0x84   :  { %527 = vmatmul.f32.gmra.mxu1 %v1396_v20  ;;  %825 = vmatpush.msrb.mxu0 %v726_v3 }
  0x85   :  { %780 = vmatpush.msrb.mxu1 %v693_v51  ;;  %v739_v51 = vld [vmem:[#allocation11 + $0x1e0] sm:$0xff] }
  0x86   :  { %826 = vmatpush.msrb.mxu0 %v725_v7  ;;  %851 = vmatpush.msrb.mxu2 %v739_v51 }
  0x87   :  { %1007 = vmatmul.msk.f32.gmra.mxu2 %vm257_vm0, %v1360_v23  ;;  %781 = vmatpush.msrb.mxu1 %v692_v57  ;;  %v691_v23 = vld [vmem:[#allocation11 + $0x60] sm:$0xff]  ;;  %v1465_v57 = vperm.slane %v1454_v37, 1 }
  0x88   :  { %827 = vmatpush.msrb.mxu0 %v724_v12  ;;  %852 = vmatpush.msrb.mxu2 %v738_v62  ;;  %v735_v12 = vld [vmem:[#allocation11 + $0x1c0] sm:$0xff] }
  0x89   :  { %782 = vmatpush.msrb.mxu1 %v691_v23 }
  0x8a   :  { %828 = vmatpush.msrb.mxu0 %v723_v15 }
  0x8b   :  { %579 = vmatmul.f32.gmra.mxu0 %v1382_v63  ;;  %v688_v63 = vld [vmem:[#allocation11 + $0x48] sm:$0xff] }
  0x8c   :  { %829 = vmatpush.msrb.mxu0 %v722_v18  ;;  %v734_v18 = vld [vmem:[#allocation11 + $0x1b8] sm:$0xff] }
  0x8e   :  { %830 = vmatpush.msrb.mxu0 %v721_v22 }
  0x8f   :  { %1008 = vmatmul.msk.f32.gmra.mxu2 %vm257_vm0, %v1366_v38  ;;  %v690_v38 = vld [vmem:[#allocation11 + $0x58] sm:$0xff] }
  0x90   :  { %783 = vmatpush.msrb.mxu1 %v690_v38  ;;  %831 = vmatpush.msrb.mxu0 %v720_v27 }
  0x92   :  { %832 = vmatpush.msrb.mxu0 %v719_v31 }
  0x93   :  { %582 = vmatmul.f32.gmra.mxu0 %v1389_v9  ;;  %v685_v9 = vld [vmem:[#allocation11 + $0x30] sm:$0xff] }
  0x94   :  { %833 = vmatpush.msrb.mxu0 %v718_v34  ;;  %v752_v34 = vld [vmem:[#allocation11 + $0x248] sm:$0xff] }
  0x96   :  { %834 = vmatpush.msrb.mxu0 %v717_v36 }
  0x97   :  { %1009 = vmatmul.msk.f32.gmra.mxu2 %vm257_vm0, %v1374_v52  ;;  %v689_v52 = vld [vmem:[#allocation11 + $0x50] sm:$0xff] }
  0x98   :  { %784 = vmatpush.msrb.mxu1 %v689_v52  ;;  %835 = vmatpush.msrb.mxu0 %v716_v42  ;;  %v711_v52 = vld [vmem:[#allocation11 + $0x100] sm:$0xff] }
  0x99   :  { %v751_v42 = vld [vmem:[#allocation11 + $0x240] sm:$0xff] }
  0x9a   :  { %785 = vmatpush.msrb.mxu1 %v688_v63  ;;  %836 = vmatpush.msrb.mxu0 %v715_v47  ;;  %v758_v63 = vld [vmem:[#allocation11 + $0x278] sm:$0xff] }
  0x9b   :  { %585 = vmatmul.f32.gmra.mxu0 %v1396_v20  ;;  %v682_v20 = vld [vmem:[#allocation11 + $0x18] sm:$0xff] }
  0x9c   :  { %786 = vmatpush.msrb.mxu1 %v687_v1  ;;  %837 = vmatpush.msrb.mxu0 %v714_v49  ;;  %v737_v1 = vld [vmem:[#allocation11 + $0x1d0] sm:$0xff]  ;;  %v750_v49 = vld [vmem:[#allocation11 + $0x238] sm:$0xff] }
  0x9d   :  { %853 = vmatpush.msrb.mxu2 %v737_v1  ;;  %v747_v1 = vld [vmem:[#allocation11 + $0x220] sm:$0xff] }
  0x9e   :  { %787 = vmatpush.msrb.mxu1 %v686_v5  ;;  %838 = vmatpush.msrb.mxu0 %v713_v53 }
  0x9f   :  { %854 = vmatpush.msrb.mxu2 %v736_v6 }
  0xa0   :  { %788 = vmatpush.msrb.mxu1 %v685_v9  ;;  %839 = vmatpush.msrb.mxu0 %v712_v11  ;;  %v1473_v9 = vperm.slane %v1454_v37, 2  ;;  %v749_v11 = vld [vmem:[#allocation11 + $0x230] sm:$0xff] }
  0xa1   :  { %855 = vmatpush.msrb.mxu2 %v735_v12  ;;  %v746_v12 = vld [vmem:[#allocation11 + $0x218] sm:$0xff] }
  0xa2   :  { %789 = vmatpush.msrb.mxu1 %v684_v13  ;;  %840 = vmatpush.msrb.mxu0 %v711_v52  ;;  %v755_v13 = vld [vmem:[#allocation11 + $0x260] sm:$0xff] }
  0xa3   :  { %v1442_v58 = vpop.f32.mrf.mxu1  ;;  %856 = vmatpush.msrb.mxu2 %v734_v18 }
  0xa4   :  { %790 = vmatpush.msrb.mxu1 %v683_v16 }
  0xa6   :  { %791 = vmatpush.msrb.mxu1 %v682_v20 }
  0xa8   :  { %792 = vmatpush.msrb.mxu1 %v681_v25 }
  0xa9   :  { %v1444_v61 = vpop.f32.mrf.mxu3 }
  0xaa   :  { %793 = vmatpush.msrb.mxu1 %v680_v29  ;;  %v753_v29 = vld [vmem:[#allocation11 + $0x250] sm:$0xff] }
  0xac   :  { %794 = vmatpush.msrb.mxu1 %v679_v32 }
  0xad   :  { %v1446_v4 = vpop.f32.mrf.mxu1 }
  0xae   :  { %871 = vmatpush.msra.mxu1 %v758_v63 }
  0xb0   :  { %872 = vmatpush.msra.mxu1 %v757_v2 }
  0xb1   :  { %v1448_v8 = vpop.f32.mrf.mxu3 }
  0xb7   :  { %v1450_v19 = vpop.f32.mrf.mxu1 }
  0xb9   :  { %v1452_v24 = vpop.f32.mrf.mxu3 }
  0xbb   :  { %v287_v28 = vpop.f32.mrf.mxu0 }
  0xbc   :  { %v288_v55 = vadd.f32 %v287_v28, %v1461_v44  ;;  %v733_v28 = vld [vmem:[#allocation11 + $0x1b0] sm:$0xff] }
  0xbd   :  { %857 = vmatpush.msrb.mxu2 %v733_v28 }
  0xbe   :  { %v317_v38 = vadd.f32 %v1442_v58, %v288_v55  ;;  %v756_v58 = vld [vmem:[#allocation11 + $0x268] sm:$0xff] }
  0xbf   :  { %873 = vmatpush.msra.mxu1 %v756_v58  ;;  %858 = vmatpush.msrb.mxu2 %v732_v33 }
  0xc0   :  { %v1456_v39 = vpop.f32.mrf.mxu1  ;;  %1041 = vtanh.f32 %v317_v38  ;;  %v748_v38 = vld [vmem:[#allocation11 + $0x228] sm:$0xff] }
  0xc1   :  { %874 = vmatpush.msra.mxu1 %v755_v13  ;;  %859 = vmatpush.msrb.mxu2 %v731_v41  ;;  %v774_v13 = vld [vmem:[#allocation11 + $0x2f8] sm:$0xff] }
  0xc2   :  { %v345_v40 = vpop.f32.mrf.mxu2  ;;  %v1458_v43 = vpop.f32.mrf.mxu3  ;;  %894 = vmatpush.msra.mxu3 %v774_v13  ;;  %v761_v13 = vld [vmem:[#allocation11 + $0x290] sm:$0xff] }
  0xc3   :  { %v290_v45 = vpop.f32.mrf.mxu0  ;;  %v346_v3 = vadd.f32 %v345_v40, %v1465_v57  ;;  %860 = vmatpush.msrb.mxu2 %v730_v48 }
  0xc4   :  { %v291_v7 = vadd.f32 %v290_v45, %v1461_v44 }
  0xc5   :  { %v375_v14 = vadd.f32 %v1444_v61, %v346_v3 }
  0xc6   :  { %v320_v20 = vadd.f32 %v1446_v4, %v291_v7  ;;  %v1042_v25 = vpop.eup %1041  ;;  %v1487_v4 = vstv %s1524_s0 }
  0xc8   :  { %v403_v56 = vpop.f32.mrf.mxu1 }
  0xc9   :  { %v404_v21 = vadd.f32 %v403_v56, %v1473_v9  ;;  %v729_v56 = vld [vmem:[#allocation11 + $0x190] sm:$0xff] }
  0xca   :  { %v348_v23 = vpop.f32.mrf.mxu2  ;;  %v432_v59 = vpop.f32.mrf.mxu3  ;;  %861 = vmatpush.msrb.mxu2 %v729_v56 }
  0xcb   :  { %v293_v60 = vpop.f32.mrf.mxu0  ;;  %v349_v26 = vadd.f32 %v348_v23, %v1465_v57 }
  0xcc   :  { %v294_v0 = vadd.f32 %v293_v60, %v1461_v44 }
  0xcd   :  { %v378_v35 = vadd.f32 %v1448_v8, %v349_v26  ;;  %v248_v26 = vperm.slane %v1454_v37, 3 }
  0xce   :  { %v323_v5 = vadd.f32 %v1450_v19, %v294_v0  ;;  %v754_v19 = vld [vmem:[#allocation11 + $0x258] sm:$0xff]  ;;  %v727_v0 = vld [vmem:[#allocation11 + $0x180] sm:$0xff] }
  0xcf   :  { %875 = vmatpush.msra.mxu1 %v754_v19  ;;  %v773_v19 = vld [vmem:[#allocation11 + $0x2f0] sm:$0xff] }
  0xd0   :  { %1043 = vtanh.f32 %v323_v5  ;;  %v406_v10 = vpop.f32.mrf.mxu1  ;;  %895 = vmatpush.msra.mxu3 %v773_v19 }
  0xd1   :  { %1045 = vtanh.f32 %v375_v14  ;;  %876 = vmatpush.msra.mxu1 %v753_v29  ;;  %v407_v8 = vadd.f32 %v406_v10, %v1473_v9 }
  0xd2   :  { %v351_v15 = vpop.f32.mrf.mxu2  ;;  %v1476_v16 = vpop.f32.mrf.mxu3 }
  0xd3   :  { %v352_v17 = vadd.f32 %v351_v15, %v1465_v57  ;;  %877 = vmatpush.msra.mxu1 %v752_v34  ;;  %v436_v60 = vadd.f32 %v1476_v16, %v407_v8  ;;  %v771_v34 = vld [vmem:[#allocation11 + $0x2e0] sm:$0xff] }
  0xd4   :  { %v296_v22 = vpop.f32.mrf.mxu0 }
  0xd5   :  { %v381_v61 = vadd.f32 %v1452_v24, %v352_v17  ;;  %v297_v27 = vadd.f32 %v296_v22, %v1461_v44  ;;  %v433_v24 = vadd.f32 %v432_v59, %v404_v21  ;;  %878 = vmatpush.msra.mxu1 %v751_v42  ;;  %v728_v59 = vld [vmem:[#allocation11 + $0x188] sm:$0xff]  ;;  %v769_v42 = vld [vmem:[#allocation11 + $0x2d0] sm:$0xff] }
  0xd6   :  { %v1044_v30 = vpop.eup %1043  ;;  %862 = vmatpush.msrb.mxu2 %v728_v59  ;;  %v744_v21 = vld [vmem:[#allocation11 + $0x208] sm:$0xff] }
  0xd7   :  { %v642_v31 = vsub.f32 %v1042_v25, %v1044_v30  ;;  %1047 = vtanh.f32 %v381_v61  ;;  %v326_v32 = vadd.f32 %v1456_v39, %v297_v27  ;;  %v1046_v50 = vpop.eup %1045  ;;  %879 = vmatpush.msra.mxu1 %v750_v49  ;;  %v772_v22 = vld [vmem:[#allocation11 + $0x2e8] sm:$0xff] }
  0xd8   :  { %1049 = vtanh.f32 %v320_v20  ;;  %863 = vmatpush.msrb.mxu2 %v727_v0  ;;  %896 = vmatpush.msra.mxu3 %v772_v22  ;;  %v759_v22 = vld [vmem:[#allocation11 + $0x280] sm:$0xff] }
  0xd9   :  { %1051 = vtanh.f32 %v326_v32  ;;  %v409_v36 = vpop.f32.mrf.mxu1  ;;  %v655_v40 = vmul.f32 %v1487_v4, %v642_v31  ;;  %880 = vmatpush.msra.mxu1 %v749_v11 }
  0xda   :  { %v410_v44 = vadd.f32 %v409_v36, %v1473_v9  ;;  %v354_v45 = vpop.f32.mrf.mxu2  ;;  %1053 = vtanh.f32 %v433_v24  ;;  %897 = vmatpush.msra.mxu3 %v771_v34 }
  0xdb   :  { %v355_v39 = vadd.f32 %v354_v45, %v1465_v57  ;;  %v438_v46 = vpop.f32.mrf.mxu3  ;;  %v667_v47 = vadd.f32 %v1044_v30, %v655_v40  ;;  %1055 = vtanh.f32 %v378_v35  ;;  %881 = vmatpush.msra.mxu1 %v748_v38  ;;  %v743_v30 = vld [vmem:[#allocation11 + $0x200] sm:$0xff]  ;;  %v770_v40 = vld [vmem:[#allocation11 + $0x2d8] sm:$0xff] }
  0xdc   :  { %v439_v53 = vadd.f32 %v438_v46, %v410_v44  ;;  %898 = vmatpush.msra.mxu3 %v770_v40 }
  0xdd   :  { %v1048_v54 = vpop.eup %1047  ;;  %v384_v55 = vadd.f32 %v1458_v43, %v355_v39  ;;  %795 = vmatmul.f32.vlgmr.msrb.gmra.mxu1 %v667_v47  ;;  %v249_v39 = vperm.slane %v1454_v37, 4  ;;  %v768_v47 = vld [vmem:[#allocation11 + $0x2c8] sm:$0xff] }
  0xde   :  { %v1050_v51 = vpop.eup %1049  ;;  %v643_v57 = vsub.f32 %v1046_v50, %v1048_v54  ;;  %1057 = vtanh.f32 %v439_v53  ;;  %882 = vmatpush.msra.mxu1 %v747_v1  ;;  %899 = vmatpush.msra.mxu3 %v769_v42  ;;  %v767_v53 = vld [vmem:[#allocation11 + $0x2c0] sm:$0xff] }
  0xdf   :  { %v1052_v23 = vpop.eup %1051  ;;  %1059 = vtanh.f32 %v384_v55  ;;  %v763_v1 = vld [vmem:[#allocation11 + $0x2a0] sm:$0xff] }
  0xe0   :  { %v461_v52 = vpop.f32.mrf.mxu0  ;;  %v656_v62 = vmul.f32 %v1487_v4, %v643_v57  ;;  %v648_v63 = vsub.f32 %v1050_v51, %v1052_v23  ;;  %v1054_v2 = vpop.eup %1053  ;;  %1061 = vtanh.f32 %v436_v60  ;;  %883 = vmatpush.msra.mxu1 %v746_v12  ;;  %900 = vmatpush.msra.mxu3 %v768_v47  ;;  %v766_v51 = vld [vmem:[#allocation11 + $0x2b8] sm:$0xff]  ;;  %v765_v57 = vld [vmem:[#allocation11 + $0x2b0] sm:$0xff]  ;;  %v764_v60 = vld [vmem:[#allocation11 + $0x2a8] sm:$0xff] }
  0xe1   :  { %v412_v43 = vpop.f32.mrf.mxu1  ;;  %v1056_v7 = vpop.eup %1055  ;;  %v462_v36 = vadd.f32 %v461_v52, %v248_v26 }
  0xe2   :  { %v413_v3 = vadd.f32 %v412_v43, %v1473_v9  ;;  %v490_v5 = vpop.f32.mrf.mxu2  ;;  %v668_v6 = vadd.f32 %v1048_v54, %v656_v62  ;;  %v661_v58 = vmul.f32 %v1487_v4, %v648_v63  ;;  %v745_v9 = vld [vmem:[#allocation11 + $0x210] sm:$0xff]  ;;  %901 = vmatpush.msra.mxu3 %v767_v53 }
  0xe3   :  { %v441_v10 = vpop.f32.mrf.mxu3  ;;  %884 = vmatpush.msra.mxu1 %v745_v9  ;;  %v491_v45 = vadd.f32 %v490_v5, %v462_v36 }
  0xe4   :  { %v1058_v14 = vpop.eup %1057  ;;  %v442_v15 = vadd.f32 %v441_v10, %v413_v3  ;;  %818 = vmatmul.f32.vlgmr.msrb.gmra.mxu3 %v668_v6  ;;  %v673_v16 = vadd.f32 %v1052_v23, %v661_v58  ;;  %v762_v10 = vld [vmem:[#allocation11 + $0x298] sm:$0xff] }
  0xe5   :  { %v1060_v17 = vpop.eup %1059  ;;  %v644_v18 = vsub.f32 %v1054_v2, %v1058_v14  ;;  %885 = vmatpush.msra.mxu1 %v744_v21  ;;  %902 = vmatpush.msra.mxu3 %v766_v51 }
  0xe6   :  { %1063 = vtanh.f32 %v442_v15  ;;  %798 = vmatmul.f32.gmra.mxu1 %v673_v16  ;;  %v649_v20 = vsub.f32 %v1056_v7, %v1060_v17  ;;  %v1062_v31 = vpop.eup %1061 }
  0xe7   :  { %v657_v25 = vmul.f32 %v1487_v4, %v644_v18  ;;  %886 = vmatpush.msra.mxu1 %v743_v30  ;;  %1065 = vtanh.f32 %v491_v45  ;;  %903 = vmatpush.msra.mxu3 %v765_v57 }
  0xe8   :  { %v464_v61 = vpop.f32.mrf.mxu0  ;;  %v662_v27 = vmul.f32 %v1487_v4, %v649_v20 }
  0xe9   :  { %v519_v28 = vpop.f32.mrf.mxu1  ;;  %v669_v29 = vadd.f32 %v1058_v14, %v657_v25  ;;  %v465_v54 = vadd.f32 %v464_v61, %v248_v26  ;;  %904 = vmatpush.msra.mxu3 %v764_v60 }
  0xea   :  { %v493_v32 = vpop.f32.mrf.mxu2  ;;  %v674_v33 = vadd.f32 %v1060_v17, %v662_v27  ;;  %v520_v11 = vadd.f32 %v519_v28, %v249_v39  ;;  %v760_v17 = vld [vmem:[#allocation11 + $0x288] sm:$0xff] }
  0xeb   :  { %v548_v24 = vpop.f32.mrf.mxu3  ;;  %841 = vmatmul.f32.vlgmr.msrb.gmra.mxu0 %v669_v29  ;;  %v494_v23 = vadd.f32 %v493_v32, %v465_v54  ;;  %905 = vmatpush.msra.mxu3 %v763_v1  ;;  %v250_v32 = vperm.slane %v1454_v37, 5  ;;  %v931_v1 = vld [vmem:[#allocation12 + $0x60] sm:$0xff] }
  0xec   :  { %v1064_v35 = vpop.eup %1063  ;;  %821 = vmatmul.f32.gmra.mxu3 %v674_v33  ;;  %v549_v59 = vadd.f32 %v548_v24, %v520_v11 }
  0xed   :  { %v650_v41 = vsub.f32 %v1062_v31, %v1064_v35  ;;  %v1066_v63 = vpop.eup %1065  ;;  %906 = vmatpush.msra.mxu3 %v762_v10  ;;  %v923_v10 = vld [vmem:[#allocation12 + $0x20] sm:$0xff] }
  0xef   :  { %v663_v44 = vmul.f32 %v1487_v4, %v650_v41  ;;  %907 = vmatpush.msra.mxu3 %v761_v13  ;;  %v921_v13 = vld [vmem:[#allocation12 + $0x10] sm:$0xff] }
  0xf0   :  { %v467_v46 = vpop.f32.mrf.mxu0 }
  0xf1   :  { %v468_v48 = vadd.f32 %v467_v46, %v248_v26  ;;  %v522_v49 = vpop.f32.mrf.mxu1  ;;  %v675_v50 = vadd.f32 %v1064_v35, %v663_v44  ;;  %908 = vmatpush.msra.mxu3 %v760_v17 }
  0xf2   :  { %v496_v8 = vpop.f32.mrf.mxu2  ;;  %v523_v6 = vadd.f32 %v522_v49, %v249_v39 }
  0xf3   :  { %v497_v55 = vadd.f32 %v496_v8, %v468_v48  ;;  %v551_v56 = vpop.f32.mrf.mxu3  ;;  %844 = vmatmul.f32.gmra.mxu0 %v675_v50  ;;  %909 = vmatpush.msra.mxu3 %v759_v22 }
  0xf4   :  { %v552_v14 = vadd.f32 %v551_v56, %v523_v6  ;;  %v926_v6 = vld [vmem:[#allocation12 + $0x38] sm:$0xff] }
  0xf5   :  { %1067 = vtanh.f32 %v497_v55 }
  0xf6   :  { %1069 = vtanh.f32 %v494_v23 }
  0xf7   :  { %1071 = vtanh.f32 %v549_v59 }
  0xf8   :  { %v470_v38 = vpop.f32.mrf.mxu0 }
  0xf9   :  { %v471_v52 = vadd.f32 %v470_v38, %v248_v26  ;;  %v525_v62 = vpop.f32.mrf.mxu1 }
  0xfa   :  { %v526_v43 = vadd.f32 %v525_v62, %v249_v39  ;;  %v499_v0 = vpop.f32.mrf.mxu2 }
  0xfb   :  { %v1068_v2 = vpop.eup %1067  ;;  %v500_v3 = vadd.f32 %v499_v0, %v471_v52  ;;  %v554_v5 = vpop.f32.mrf.mxu3  ;;  %v932_v0 = vld [vmem:[#allocation12 + $0x68] sm:$0xff] }
  0xfc   :  { %v645_v58 = vsub.f32 %v1066_v63, %v1068_v2  ;;  %v555_v7 = vadd.f32 %v554_v5, %v526_v43  ;;  %v1070_v18 = vpop.eup %1069  ;;  %v934_v63 = vld [vmem:[#allocation12 + $0x78] sm:$0xff]  ;;  %v933_v43 = vld [vmem:[#allocation12 + $0x70] sm:$0xff]  ;;  %v928_v5 = vld [vmem:[#allocation12 + $0x48] sm:$0xff] }
  0xfd   :  { %1073 = vtanh.f32 %v500_v3  ;;  %v1072_v19 = vpop.eup %1071  ;;  %939 = vmatpush.msra.mxu0 %v934_v63  ;;  %1010 = vmatpush.msra.mxu2 %v934_v63  ;;  %v929_v3 = vld [vmem:[#allocation12 + $0x50] sm:$0xff] }
  0xfe   :  { %1075 = vtanh.f32 %v555_v7  ;;  %v658_v12 = vmul.f32 %v1487_v4, %v645_v58  ;;  %v925_v58 = vld [vmem:[#allocation12 + $0x30] sm:$0xff]  ;;  %v924_v7 = vld [vmem:[#allocation12 + $0x28] sm:$0xff] }
  0xff   :  { %1077 = vtanh.f32 %v552_v14  ;;  %940 = vmatpush.msra.mxu0 %v933_v43  ;;  %1011 = vmatpush.msra.mxu2 %v933_v43  ;;  %v920_v14 = vld [vmem:[#allocation12 + $0x8] sm:$0xff] }
 0x100   :  { %v577_v15 = vpop.f32.mrf.mxu0  ;;  %v670_v16 = vadd.f32 %v1068_v2, %v658_v12  ;;  %v930_v2 = vld [vmem:[#allocation12 + $0x58] sm:$0xff] }
 0x101   :  { %v528_v9 = vpop.f32.mrf.mxu1  ;;  %v578_v41 = vadd.f32 %v577_v15, %v250_v32  ;;  %941 = vmatpush.msra.mxu0 %v932_v0  ;;  %1012 = vmatpush.msra.mxu2 %v932_v0  ;;  %v922_v12 = vld [vmem:[#allocation12 + $0x18] sm:$0xff]  ;;  %v919_v15 = vld [vmem:[#allocation12] sm:$0xff] }
 0x102   :  { %v529_v20 = vadd.f32 %v528_v9, %v249_v39  ;;  %v606_v21 = vpop.f32.mrf.mxu2  ;;  %864 = vmatmul.f32.vlgmr.msrb.gmra.mxu2 %v670_v16 }
 0x103   :  { %v1074_v25 = vpop.eup %1073  ;;  %v557_v26 = vpop.f32.mrf.mxu3  ;;  %v607_v45 = vadd.f32 %v606_v21, %v578_v41  ;;  %942 = vmatpush.msra.mxu0 %v931_v1  ;;  %1013 = vmatpush.msra.mxu2 %v931_v1 }
 0x104   :  { %v1076_v61 = vpop.eup %1075  ;;  %v558_v27 = vadd.f32 %v557_v26, %v529_v20  ;;  %v651_v28 = vsub.f32 %v1070_v18, %v1074_v25  ;;  %v1039_v18 = vld [vmem:[%s1530_s6] ss:$0 sm:$0xff] }
 0x105   :  { %v646_v29 = vsub.f32 %v1072_v19, %v1076_v61  ;;  %v1078_v35 = vpop.eup %1077  ;;  %943 = vmatpush.msra.mxu0 %v930_v2  ;;  %1014 = vmatpush.msra.mxu2 %v930_v2 }
 0x106   :  { %1079 = vtanh.f32 %v558_v27  ;;  %v664_v30 = vmul.f32 %v1487_v4, %v651_v28 }
 0x107   :  { %v659_v31 = vmul.f32 %v1487_v4, %v646_v29  ;;  %1081 = vtanh.f32 %v607_v45  ;;  %944 = vmatpush.msra.mxu0 %v929_v3  ;;  %1015 = vmatpush.msra.mxu2 %v929_v3 }
 0x108   :  { %v580_v33 = vpop.f32.mrf.mxu0  ;;  %v676_v34 = vadd.f32 %v1074_v25, %v664_v30 }
 0x109   :  { %v671_v24 = vadd.f32 %v1076_v61, %v659_v31  ;;  %v581_v37 = vadd.f32 %v580_v33, %v250_v32  ;;  %945 = vmatpush.msra.mxu0 %v928_v5  ;;  %1016 = vmatpush.msra.mxu2 %v928_v5 }
 0x10a   :  { %v609_v36 = vpop.f32.mrf.mxu2  ;;  %867 = vmatmul.f32.gmra.mxu2 %v676_v34 }
 0x10b   :  { %887 = vmatmul.f32.vlgmr.msra.gmra.mxu1 %v671_v24  ;;  %v610_v50 = vadd.f32 %v609_v36, %v581_v37 }
 0x10c   :  { %v1080_v40 = vpop.eup %1079 }
 0x10d   :  { %v652_v42 = vsub.f32 %v1078_v35, %v1080_v40  ;;  %v1082_v54 = vpop.eup %1081 }
 0x10f   :  { %v665_v44 = vmul.f32 %v1487_v4, %v652_v42 }
 0x110   :  { %v583_v39 = vpop.f32.mrf.mxu0 }
 0x111   :  { %v584_v46 = vadd.f32 %v583_v39, %v250_v32  ;;  %v677_v47 = vadd.f32 %v1080_v40, %v665_v44  ;;  %v1040_v39 = vld [vmem:[%s1532_s8] ss:$0 sm:$0xff] }
 0x112   :  { %v612_v48 = vpop.f32.mrf.mxu2 }
 0x113   :  { %v613_v49 = vadd.f32 %v612_v48, %v584_v46  ;;  %890 = vmatmul.f32.gmra.mxu1 %v677_v47 }
 0x115   :  { %1083 = vtanh.f32 %v613_v49 }
 0x116   :  { %1085 = vtanh.f32 %v610_v50 }
 0x118   :  { %v586_v8 = vpop.f32.mrf.mxu0 }
 0x119   :  { %v587_v53 = vadd.f32 %v586_v8, %v250_v32 }
 0x11a   :  { %v615_v55 = vpop.f32.mrf.mxu2 }
 0x11b   :  { %v1084_v56 = vpop.eup %1083  ;;  %v616_v11 = vadd.f32 %v615_v55, %v587_v53 }
 0x11c   :  { %v647_v51 = vsub.f32 %v1082_v54, %v1084_v56  ;;  %v1086_v59 = vpop.eup %1085 }
 0x11d   :  { %1087 = vtanh.f32 %v616_v11 }
 0x11e   :  { %v660_v57 = vmul.f32 %v1487_v4, %v647_v51 }
 0x120   :  { %v672_v23 = vadd.f32 %v1084_v56, %v660_v57 }
 0x122   :  { %910 = vmatmul.f32.vlgmr.msra.gmra.mxu3 %v672_v23 }
 0x123   :  { %v1088_v38 = vpop.eup %1087 }
 0x124   :  { %v653_v60 = vsub.f32 %v1086_v59, %v1088_v38 }
 0x126   :  { %v666_v52 = vmul.f32 %v1487_v4, %v653_v60  ;;  %v927_v4 = vld [vmem:[#allocation12 + $0x40] sm:$0xff] }
 0x127   :  { %946 = vmatpush.msra.mxu0 %v927_v4  ;;  %1017 = vmatpush.msra.mxu2 %v927_v4 }
 0x128   :  { %v678_v62 = vadd.f32 %v1088_v38, %v666_v52 }
 0x129   :  { %947 = vmatpush.msra.mxu0 %v926_v6  ;;  %1018 = vmatpush.msra.mxu2 %v926_v6 }
 0x12a   :  { %913 = vmatmul.f32.gmra.mxu3 %v678_v62 }
 0x12b   :  { %948 = vmatpush.msra.mxu0 %v925_v58  ;;  %1019 = vmatpush.msra.mxu2 %v925_v58 }
 0x12d   :  { %949 = vmatpush.msra.mxu0 %v924_v7  ;;  %1020 = vmatpush.msra.mxu2 %v924_v7 }
 0x12f   :  { %950 = vmatpush.msra.mxu0 %v923_v10  ;;  %1021 = vmatpush.msra.mxu2 %v923_v10 }
 0x131   :  { %951 = vmatpush.msra.mxu0 %v922_v12  ;;  %1022 = vmatpush.msra.mxu2 %v922_v12 }
 0x133   :  { %952 = vmatpush.msra.mxu0 %v921_v13  ;;  %1023 = vmatpush.msra.mxu2 %v921_v13 }
 0x135   :  { %953 = vmatpush.msra.mxu0 %v920_v14  ;;  %1024 = vmatpush.msra.mxu2 %v920_v14 }
 0x137   :  { %954 = vmatpush.msra.mxu0 %v919_v15  ;;  %1025 = vmatpush.msra.mxu2 %v919_v15 }
 0x15a   :  { %v796_v16 = vpop.f32.mrf.mxu1 }
 0x15b   :  { %v797_v19 = vadd.f32 %v1039_v18, %v796_v16 }
 0x163   :  { %v799_v9 = vpop.f32.mrf.mxu1 }
 0x164   :  { %v800_v27 = vadd.f32 %v1039_v18, %v799_v9 }
 0x167   :  { %v819_v17 = vpop.f32.mrf.mxu3 }
 0x168   :  { %v842_v20 = vpop.f32.mrf.mxu0  ;;  %v820_v21 = vadd.f32 %v819_v17, %v797_v19 }
 0x16a   :  { %v843_v26 = vadd.f32 %v842_v20, %v820_v21 }
 0x16f   :  { %v822_v25 = vpop.f32.mrf.mxu3 }
 0x170   :  { %v823_v29 = vadd.f32 %v822_v25, %v800_v27  ;;  %v845_v30 = vpop.f32.mrf.mxu0 }
 0x172   :  { %v846_v34 = vadd.f32 %v845_v30, %v823_v29 }
 0x185   :  { %v865_v22 = vpop.f32.mrf.mxu2 }
 0x186   :  { %v866_v28 = vadd.f32 %v865_v22, %v843_v26 }
 0x188   :  { %v888_v61 = vpop.f32.mrf.mxu1 }
 0x189   :  { %v889_v31 = vadd.f32 %v888_v61, %v866_v28 }
 0x18d   :  { %v868_v32 = vpop.f32.mrf.mxu2 }
 0x18e   :  { %v869_v35 = vadd.f32 %v868_v32, %v846_v34 }
 0x190   :  { %v891_v40 = vpop.f32.mrf.mxu1 }
 0x191   :  { %v892_v41 = vadd.f32 %v891_v40, %v869_v35 }
 0x1a5   :  { %v911_v33 = vpop.f32.mrf.mxu3 }
 0x1a6   :  { %v912_v24 = vadd.f32 %v911_v33, %v889_v31 }
 0x1a8   :  { %v917_v36 = vmax.f32 %v912_v24, 0.0 }
 0x1aa   :  { %955 = vmatmul.f32.vlgmr.msra.gmra.mxu0 %v917_v36 }
 0x1ad   :  { %v914_v42 = vpop.f32.mrf.mxu3 }
 0x1ae   :  { %v915_v44 = vadd.f32 %v914_v42, %v892_v41 }
 0x1b0   :  { %v918_v45 = vmax.f32 %v915_v44, 0.0 }
 0x1b2   :  { %958 = vmatmul.f32.vlgmr.msra.gmra.mxu2 %v918_v45 }
 0x227   :  { %v956_v46 = vpop.f32.mrf.mxu0 }
 0x228   :  { %v957_v47 = vadd.f32 %v1040_v39, %v956_v46 }
 0x22a   :  { %962 = vst [vmem:[#allocation14] sm:$0xff] %v957_v47 }
 0x235   :  { %v959_v48 = vpop.f32.mrf.mxu2 }
 0x236   :  { %v960_v49 = vadd.f32 %v1040_v39, %v959_v48 }
 0x238   :  { %963 = vst [vmem:[#allocation14 + $0x8] sm:$0xff] %v960_v49 }
 0x239   :  { %976 = dma.vmem_to_hbm [thread:$0]  %s969_s23, 256, %s971_s25, [#allocation5], %s1276_s16, %s1276_s16, %s1277_s17  }
 0x23a   :  { %1265 = dma.done.wait [#allocation5], 256  }
 0x23b   :  { %1266 = vsyncadd [#allocation5], 4294967040 }
 0x23c   :  { %981 = vsyncpa [#allocation4], 1 }
 0x23d   :  { %982 = vsyncpa [#allocation7], 1 }
 0x23e   :  { %983 = vsyncpa [#allocation10], 1 }
 0x23f   :  { %984 = vsyncpa [#allocation13], 1 }
 0x240   :  { %985 = vsyncpa [#allocation5], 1 }

// kernel: tpu_custom_call.1
= control target key start
LH: loop header
LB: loop body
LE: loop exit
PB: predicated region body
PF: predicated region fallthrough
CT: control target
= control target key end

     0   :  { %15 = vsyncpa [#allocation4], 0  ;;  %s1524_s0 = inlined_call_operand.<no memory space> [shape: f32[1], index: 0, kind: input, shape index: {}]   ;;  %s1525_s1 = inlined_call_operand.hbm [shape: f32[16,144], index: 1, kind: input, shape index: {}]   ;;  %s1526_s2 = inlined_call_operand.hbm [shape: f32[16,144], index: 2, kind: input, shape index: {}]   ;;  %s1527_s3 = inlined_call_operand.hbm [shape: f32[144,768], index: 3, kind: input, shape index: {}]   ;;  %s1528_s4 = inlined_call_operand.hbm [shape: f32[1,768], index: 4, kind: input, shape index: {}]   ;;  %s1529_s5 = inlined_call_operand.hbm [shape: f32[768,128], index: 5, kind: input, shape index: {}]   ;;  %s1530_s6 = inlined_call_operand.vmem [shape: f32[1,128], index: 6, kind: input, shape index: {}]   ;;  %s1531_s7 = inlined_call_operand.hbm [shape: f32[128,128], index: 7, kind: input, shape index: {}]   ;;  %s1532_s8 = inlined_call_operand.vmem [shape: f32[1,128], index: 8, kind: input, shape index: {}]   ;;  %s1533_s9 = inlined_call_operand.hbm [shape: f32[16,128], index: 9, kind: output, shape index: {}]  }
   0x1   :  { %16 = vsyncpa [#allocation7], 0 }
   0x2   :  { %17 = vsyncpa [#allocation10], 0 }
   0x3   :  { %18 = vsyncpa [#allocation13], 0 }
   0x4   :  { %19 = vsyncpa [#allocation5], 0  ;;  %s39_s11 = sshll.u32 %s1526_s2, 4  ;;  %s1267_s12 = smov [#allocation6]   ;;  %s40_s11 = int_to_ptr.hbm [resolvable:$true] %s39_s11 }
   0x5   :  { %s41_s13 = sshll.u32 %s1267_s12, 4  ;;  %s66_s16 = sshll.u32 %s1528_s4, 4  ;;  %s42_s13 = int_to_ptr.vmem [resolvable:$true] %s41_s13  ;;  %s67_s16 = int_to_ptr.hbm [resolvable:$true] %s66_s16 }
   0x6   :  { %s1268_s17 = smov 256   ;;  %s1269_s18 = smov 16  }
   0x7   :  { %47 = dma.hbm_to_vmem [thread:$0]  %s40_s11, 512, %s42_s13, [#allocation7], %s1268_s17, %s1268_s17, %s1269_s18  }
   0x8   :  { %s1270_s19 = smov [#allocation9]   ;;  %s26_s23 = sshll.u32 %s1525_s1, 4  ;;  %s27_s23 = int_to_ptr.hbm [resolvable:$true] %s26_s23 }
   0x9   :  { %s68_s20 = sshll.u32 %s1270_s19, 4  ;;  %s52_s25 = sshll.u32 %s1527_s3, 4  ;;  %s69_s20 = int_to_ptr.vmem [resolvable:$true] %s68_s20  ;;  %s53_s25 = int_to_ptr.hbm [resolvable:$true] %s52_s25 }
   0xa   :  { %71 = dma.hbm_to_vmem [thread:$0]  %s67_s16, 96, %s69_s20, [#allocation10]  }
   0xb   :  { %s1271_s26 = smov [#allocation3]   ;;  %s1272_s4 = smov [#allocation8]  }
   0xc   :  { %s28_s27 = sshll.u32 %s1271_s26, 4  ;;  %s54_s28 = sshll.u32 %s1272_s4, 4  ;;  %s29_s27 = int_to_ptr.vmem [resolvable:$true] %s28_s27  ;;  %s55_s28 = int_to_ptr.vmem [resolvable:$true] %s54_s28 }
   0xd   :  { %34 = dma.hbm_to_vmem [thread:$0]  %s27_s23, 512, %s29_s27, [#allocation4], %s1268_s17, %s1268_s17, %s1269_s18  }
   0xe   :  { %s1273_s29 = smov 768   ;;  %s1274_s30 = smov 48  }
   0xf   :  { %60 = dma.hbm_to_vmem [thread:$0]  %s53_s25, 13824, %s55_s28, [#allocation7], %s1273_s29, %s1273_s29, %s1274_s30  }
  0x10   :  { %s76_s11 = sshll.u32 %s1529_s5, 4  ;;  %s1275_s12 = smov [#allocation11]   ;;  %s77_s11 = int_to_ptr.hbm [resolvable:$true] %s76_s11 }
  0x11   :  { %s78_s13 = sshll.u32 %s1275_s12, 4  ;;  %s91_s15 = sshll.u32 %s1531_s7, 4  ;;  %s79_s13 = int_to_ptr.vmem [resolvable:$true] %s78_s13  ;;  %s92_s15 = int_to_ptr.hbm [resolvable:$true] %s91_s15 }
  0x12   :  { %s1276_s16 = smov 128   ;;  %s1277_s17 = smov 8  }
  0x13   :  { %84 = dma.hbm_to_vmem [thread:$0]  %s77_s11, 12288, %s79_s13, [#allocation10], %s1276_s16, %s1276_s16, %s1277_s17  }
  0x14   :  { %s1278_s18 = smov [#allocation12]  }
  0x15   :  { %s93_s19 = sshll.u32 %s1278_s18, 4  ;;  %s94_s19 = int_to_ptr.vmem [resolvable:$true] %s93_s19 }
  0x16   :  { %99 = dma.hbm_to_vmem [thread:$0]  %s92_s15, 2048, %s94_s19, [#allocation13], %s1276_s16, %s1276_s16, %s1277_s17  }
  0x17   :  { %1257 = dma.done.wait [#allocation4], 512  }
  0x18   :  { %1258 = vsyncadd [#allocation4], 4294966784 }
  0x19   :  { %1259 = dma.done.wait [#allocation7], 14336  }
  0x1a   :  { %1260 = vsyncadd [#allocation7], 4294952960 }
  0x1b   :  { %1261 = dma.done.wait [#allocation10], 12384  }
  0x1c   :  { %1262 = vsyncadd [#allocation10], 4294954912 }
  0x1d   :  { %1263 = dma.done.wait [#allocation13], 2048  }
  0x1e   :  { %1264 = vsyncadd [#allocation13], 4294965248  ;;  %v217_v0 = vld [vmem:[#allocation8 + $0x2d0] sm:$0xff]  ;;  %v218_v1 = vld [vmem:[#allocation8 + $0x2d8] sm:$0xff]  ;;  %vm257_vm0 = vcmask 130048   ;;  %s1279_s22 = smov [#allocation14]  }
  0x1f   :  { %v211_v2 = vld [vmem:[#allocation8 + $0x2a0] sm:$0xff]  ;;  %270 = vmatpush.msra.mxu0 %v217_v0  ;;  %328 = vmatpush.msra.mxu2 %v218_v1  ;;  %v212_v3 = vld [vmem:[#allocation8 + $0x2a8] sm:$0xff]  ;;  %v205_v4 = vld [vmem:[#allocation8 + $0x270] sm:$0xff]  ;;  %s968_s23 = sshll.u32 %s1279_s22, 4  ;;  %s970_s25 = sshll.u32 %s1533_s9, 4  ;;  %s969_s23 = int_to_ptr.vmem [resolvable:$true] %s968_s23  ;;  %s971_s25 = int_to_ptr.hbm [resolvable:$true] %s970_s25 }
  0x20   :  { %v206_v5 = vld [vmem:[#allocation8 + $0x278] sm:$0xff]  ;;  %v224_v7 = vld [vmem:[#allocation8 + $0x308] sm:$0xff]  ;;  %v199_v8 = vld [vmem:[#allocation8 + $0x240] sm:$0xff] }
  0x21   :  { %v230_v6 = vld [vmem:[#allocation8 + $0x338] sm:$0xff]  ;;  %271 = vmatpush.msra.mxu0 %v211_v2  ;;  %329 = vmatpush.msra.mxu2 %v212_v3  ;;  %v200_v9 = vld [vmem:[#allocation8 + $0x248] sm:$0xff]  ;;  %v229_v10 = vld [vmem:[#allocation8 + $0x330] sm:$0xff] }
  0x22   :  { %371 = vmatpush.msra.mxu3 %v230_v6  ;;  %v1354_v11 = vld [vmem:[#allocation3 + $0x8] sm:$0xff]  ;;  %v223_v12 = vld [vmem:[#allocation8 + $0x300] sm:$0xff]  ;;  %v193_v13 = vld [vmem:[#allocation8 + $0x210] sm:$0xff]  ;;  %313 = vmatpush.msra.mxu1 %v229_v10 }
  0x23   :  { %272 = vmatpush.msra.mxu0 %v205_v4  ;;  %330 = vmatpush.msra.mxu2 %v206_v5  ;;  %v194_v14 = vld [vmem:[#allocation8 + $0x218] sm:$0xff]  ;;  %v187_v15 = vld [vmem:[#allocation8 + $0x1e0] sm:$0xff]  ;;  %v188_v16 = vld [vmem:[#allocation8 + $0x1e8] sm:$0xff] }
  0x24   :  { %372 = vmatpush.msra.mxu3 %v224_v7  ;;  %314 = vmatpush.msra.mxu1 %v223_v12  ;;  %v219_v17 = vld [vmem:[#allocation8 + $0x2e0] sm:$0xff]  ;;  %v181_v18 = vld [vmem:[#allocation8 + $0x1b0] sm:$0xff]  ;;  %v182_v19 = vld [vmem:[#allocation8 + $0x1b8] sm:$0xff] }
  0x25   :  { %273 = vmatpush.msra.mxu0 %v199_v8  ;;  %331 = vmatpush.msra.mxu2 %v200_v9  ;;  %v213_v20 = vld [vmem:[#allocation8 + $0x2b0] sm:$0xff]  ;;  %v175_v21 = vld [vmem:[#allocation8 + $0x180] sm:$0xff]  ;;  %v176_v22 = vld [vmem:[#allocation8 + $0x188] sm:$0xff] }
  0x26   :  { %990 = vmatmul.msk.f32.vlgmr.msra.gmra.mxu3 %vm257_vm0, %v1354_v11  ;;  %986 = vmatmul.msk.f32.vlgmr.msra.gmra.mxu1 %vm257_vm0, %v1354_v11  ;;  %v1360_v23 = vld [vmem:[#allocation3 + $0x18] sm:$0xff]  ;;  %v207_v24 = vld [vmem:[#allocation8 + $0x280] sm:$0xff]  ;;  %v169_v25 = vld [vmem:[#allocation8 + $0x150] sm:$0xff] }
  0x27   :  { %274 = vmatpush.msra.mxu0 %v193_v13  ;;  %332 = vmatpush.msra.mxu2 %v194_v14  ;;  %v170_v26 = vld [vmem:[#allocation8 + $0x158] sm:$0xff]  ;;  %v201_v27 = vld [vmem:[#allocation8 + $0x250] sm:$0xff]  ;;  %v163_v28 = vld [vmem:[#allocation8 + $0x120] sm:$0xff] }
  0x28   :  { %386 = vmatpush.msrb.mxu1 %v219_v17  ;;  %v164_v29 = vld [vmem:[#allocation8 + $0x128] sm:$0xff]  ;;  %v157_v30 = vld [vmem:[#allocation8 + $0xf0] sm:$0xff]  ;;  %v158_v31 = vld [vmem:[#allocation8 + $0xf8] sm:$0xff] }
  0x29   :  { %275 = vmatpush.msra.mxu0 %v187_v15  ;;  %333 = vmatpush.msra.mxu2 %v188_v16  ;;  %v231_v32 = vld [vmem:[#allocation8 + $0x340] sm:$0xff]  ;;  %v225_v34 = vld [vmem:[#allocation8 + $0x310] sm:$0xff]  ;;  %v152_v36 = vld [vmem:[#allocation8 + $0xc8] sm:$0xff] }
  0x2a   :  { %387 = vmatpush.msrb.mxu1 %v213_v20  ;;  %v195_v33 = vld [vmem:[#allocation8 + $0x220] sm:$0xff]  ;;  %429 = vmatpush.msrb.mxu3 %v231_v32  ;;  %v189_v37 = vld [vmem:[#allocation8 + $0x1f0] sm:$0xff]  ;;  %v1366_v38 = vld [vmem:[#allocation6 + $0x8] sm:$0xff] }
  0x2b   :  { %276 = vmatpush.msra.mxu0 %v181_v18  ;;  %334 = vmatpush.msra.mxu2 %v182_v19  ;;  %v151_v35 = vld [vmem:[#allocation8 + $0xc0] sm:$0xff]  ;;  %v145_v39 = vld [vmem:[#allocation8 + $0x90] sm:$0xff]  ;;  %v146_v40 = vld [vmem:[#allocation8 + $0x98] sm:$0xff] }
  0x2c   :  { %388 = vmatpush.msrb.mxu1 %v207_v24  ;;  %430 = vmatpush.msrb.mxu3 %v225_v34  ;;  %v183_v41 = vld [vmem:[#allocation8 + $0x1c0] sm:$0xff]  ;;  %v140_v43 = vld [vmem:[#allocation8 + $0x68] sm:$0xff]  ;;  %v177_v44 = vld [vmem:[#allocation8 + $0x190] sm:$0xff] }
  0x2d   :  { %277 = vmatpush.msra.mxu0 %v175_v21  ;;  %335 = vmatpush.msra.mxu2 %v176_v22  ;;  %v139_v42 = vld [vmem:[#allocation8 + $0x60] sm:$0xff]  ;;  %v133_v45 = vld [vmem:[#allocation8 + $0x30] sm:$0xff]  ;;  %v134_v46 = vld [vmem:[#allocation8 + $0x38] sm:$0xff] }
  0x2e   :  { %991 = vmatmul.msk.f32.gmra.mxu3 %vm257_vm0, %v1360_v23  ;;  %389 = vmatpush.msrb.mxu1 %v201_v27  ;;  %v171_v47 = vld [vmem:[#allocation8 + $0x160] sm:$0xff]  ;;  %v128_v49 = vld [vmem:[#allocation8 + $0x8] sm:$0xff]  ;;  %v165_v50 = vld [vmem:[#allocation8 + $0x130] sm:$0xff] }
  0x2f   :  { %278 = vmatpush.msra.mxu0 %v169_v25  ;;  %336 = vmatpush.msra.mxu2 %v170_v26  ;;  %v127_v48 = vld [vmem:[#allocation8] sm:$0xff]  ;;  %v1374_v52 = vld [vmem:[#allocation6 + $0x18] sm:$0xff]  ;;  %v232_v53 = vld [vmem:[#allocation8 + $0x348] sm:$0xff] }
  0x30   :  { %987 = vmatmul.msk.f32.gmra.mxu1 %vm257_vm0, %v1360_v23  ;;  %v1372_v51 = vld [vmem:[#allocation3] sm:$0xff]  ;;  %v220_v55 = vld [vmem:[#allocation8 + $0x2e8] sm:$0xff]  ;;  %v226_v56 = vld [vmem:[#allocation8 + $0x318] sm:$0xff] }
  0x31   :  { %279 = vmatpush.msra.mxu0 %v163_v28  ;;  %337 = vmatpush.msra.mxu2 %v164_v29  ;;  %v159_v54 = vld [vmem:[#allocation8 + $0x100] sm:$0xff]  ;;  %v153_v57 = vld [vmem:[#allocation8 + $0xd0] sm:$0xff]  ;;  %v214_v58 = vld [vmem:[#allocation8 + $0x2b8] sm:$0xff] }
  0x32   :  { %390 = vmatpush.msrb.mxu1 %v195_v33  ;;  %v234_v59 = vld [vmem:[#allocation8 + $0x358] sm:$0xff]  ;;  %v147_v60 = vld [vmem:[#allocation8 + $0xa0] sm:$0xff]  ;;  %v208_v61 = vld [vmem:[#allocation8 + $0x288] sm:$0xff] }
  0x33   :  { %280 = vmatpush.msra.mxu0 %v157_v30  ;;  %338 = vmatpush.msra.mxu2 %v158_v31  ;;  %v141_v62 = vld [vmem:[#allocation8 + $0x70] sm:$0xff]  ;;  %v135_v1 = vld [vmem:[#allocation8 + $0x40] sm:$0xff]  ;;  %v202_v2 = vld [vmem:[#allocation8 + $0x258] sm:$0xff] }
  0x34   :  { %391 = vmatpush.msrb.mxu1 %v189_v37  ;;  %v1382_v63 = vld [vmem:[#allocation3 + $0x10] sm:$0xff]  ;;  %v227_v3 = vld [vmem:[#allocation8 + $0x320] sm:$0xff]  ;;  %v196_v5 = vld [vmem:[#allocation8 + $0x228] sm:$0xff] }
  0x35   :  { %281 = vmatpush.msra.mxu0 %v151_v35  ;;  %339 = vmatpush.msra.mxu2 %v152_v36  ;;  %v233_v0 = vld [vmem:[#allocation8 + $0x350] sm:$0xff]  ;;  %v190_v7 = vld [vmem:[#allocation8 + $0x1f8] sm:$0xff]  ;;  %v215_v8 = vld [vmem:[#allocation8 + $0x2c0] sm:$0xff] }
  0x36   :  { %992 = vmatmul.msk.f32.gmra.mxu3 %vm257_vm0, %v1366_v38  ;;  %392 = vmatpush.msrb.mxu1 %v183_v41  ;;  %v129_v4 = vld [vmem:[#allocation8 + $0x10] sm:$0xff]  ;;  %v1389_v9 = vld [vmem:[#allocation6] sm:$0xff]  ;;  %v184_v10 = vld [vmem:[#allocation8 + $0x1c8] sm:$0xff] }
  0x37   :  { %282 = vmatpush.msra.mxu0 %v145_v39  ;;  %340 = vmatpush.msra.mxu2 %v146_v40  ;;  %v221_v6 = vld [vmem:[#allocation8 + $0x2f0] sm:$0xff]  ;;  %v178_v13 = vld [vmem:[#allocation8 + $0x198] sm:$0xff]  ;;  %v203_v14 = vld [vmem:[#allocation8 + $0x260] sm:$0xff] }
  0x38   :  { %393 = vmatpush.msrb.mxu1 %v177_v44  ;;  %545 = vmatpush.msra.mxu3 %v233_v0  ;;  %v209_v12 = vld [vmem:[#allocation8 + $0x290] sm:$0xff]  ;;  %v228_v15 = vld [vmem:[#allocation8 + $0x328] sm:$0xff]  ;;  %v166_v18 = vld [vmem:[#allocation8 + $0x138] sm:$0xff] }
  0x39   :  { %283 = vmatpush.msra.mxu0 %v139_v42  ;;  %341 = vmatpush.msra.mxu2 %v140_v43  ;;  %v172_v16 = vld [vmem:[#allocation8 + $0x168] sm:$0xff]  ;;  %v197_v17 = vld [vmem:[#allocation8 + $0x230] sm:$0xff]  ;;  %v191_v19 = vld [vmem:[#allocation8 + $0x200] sm:$0xff] }
  0x3a   :  { %988 = vmatmul.msk.f32.gmra.mxu1 %vm257_vm0, %v1366_v38  ;;  %546 = vmatpush.msra.mxu3 %v227_v3  ;;  %v1396_v20 = vld [vmem:[#allocation6 + $0x10] sm:$0xff]  ;;  %v160_v21 = vld [vmem:[#allocation8 + $0x108] sm:$0xff]  ;;  %v154_v24 = vld [vmem:[#allocation8 + $0xd8] sm:$0xff] }
  0x3b   :  { %284 = vmatpush.msra.mxu0 %v133_v45  ;;  %342 = vmatpush.msra.mxu2 %v134_v46  ;;  %v185_v22 = vld [vmem:[#allocation8 + $0x1d0] sm:$0xff]  ;;  %v179_v25 = vld [vmem:[#allocation8 + $0x1a0] sm:$0xff]  ;;  %v148_v26 = vld [vmem:[#allocation8 + $0xa8] sm:$0xff] }
  0x3c   :  { %394 = vmatpush.msrb.mxu1 %v171_v47  ;;  %v173_v27 = vld [vmem:[#allocation8 + $0x170] sm:$0xff]  ;;  %v142_v28 = vld [vmem:[#allocation8 + $0x78] sm:$0xff]  ;;  %v167_v29 = vld [vmem:[#allocation8 + $0x140] sm:$0xff] }
  0x3d   :  { %285 = vmatpush.msra.mxu0 %v127_v48  ;;  %343 = vmatpush.msra.mxu2 %v128_v49  ;;  %v136_v30 = vld [vmem:[#allocation8 + $0x48] sm:$0xff]  ;;  %v161_v31 = vld [vmem:[#allocation8 + $0x110] sm:$0xff]  ;;  %v130_v32 = vld [vmem:[#allocation8 + $0x18] sm:$0xff] }
  0x3e   :  { %395 = vmatpush.msrb.mxu1 %v165_v50  ;;  %286 = vmatmul.f32.vlgmr.msra.gmra.mxu0 %v1372_v51  ;;  %v155_v33 = vld [vmem:[#allocation8 + $0xe0] sm:$0xff]  ;;  %v222_v34 = vld [vmem:[#allocation8 + $0x2f8] sm:$0xff]  ;;  %v149_v35 = vld [vmem:[#allocation8 + $0xb0] sm:$0xff] }
  0x3f   :  { %344 = vmatmul.f32.vlgmr.msra.gmra.mxu2 %v1372_v51  ;;  %993 = vmatmul.msk.f32.gmra.mxu3 %vm257_vm0, %v1374_v52  ;;  %v216_v36 = vld [vmem:[#allocation8 + $0x2c8] sm:$0xff]  ;;  %v143_v37 = vld [vmem:[#allocation8 + $0x80] sm:$0xff]  ;;  %v210_v39 = vld [vmem:[#allocation8 + $0x298] sm:$0xff] }
  0x40   :  { %487 = vmatpush.msrb.mxu2 %v232_v53  ;;  %396 = vmatpush.msrb.mxu1 %v159_v54  ;;  %v137_v40 = vld [vmem:[#allocation8 + $0x50] sm:$0xff]  ;;  %v204_v41 = vld [vmem:[#allocation8 + $0x268] sm:$0xff]  ;;  %v131_v42 = vld [vmem:[#allocation8 + $0x20] sm:$0xff] }
  0x41   :  { %444 = vmatpush.msrb.mxu0 %v220_v55  ;;  %v198_v43 = vld [vmem:[#allocation8 + $0x238] sm:$0xff]  ;;  %v192_v44 = vld [vmem:[#allocation8 + $0x208] sm:$0xff] }
  0x42   :  { %488 = vmatpush.msrb.mxu2 %v226_v56  ;;  %397 = vmatpush.msrb.mxu1 %v153_v57  ;;  %v186_v45 = vld [vmem:[#allocation8 + $0x1d8] sm:$0xff]  ;;  %v180_v46 = vld [vmem:[#allocation8 + $0x1a8] sm:$0xff] }
  0x43   :  { %445 = vmatpush.msrb.mxu0 %v214_v58  ;;  %989 = vmatmul.msk.f32.gmra.mxu1 %vm257_vm0, %v1374_v52  ;;  %v174_v47 = vld [vmem:[#allocation8 + $0x178] sm:$0xff]  ;;  %v168_v48 = vld [vmem:[#allocation8 + $0x148] sm:$0xff] }
  0x44   :  { %603 = vmatpush.msra.mxu2 %v234_v59  ;;  %398 = vmatpush.msrb.mxu1 %v147_v60  ;;  %v162_v49 = vld [vmem:[#allocation8 + $0x118] sm:$0xff]  ;;  %v156_v50 = vld [vmem:[#allocation8 + $0xe8] sm:$0xff] }
  0x45   :  { %446 = vmatpush.msrb.mxu0 %v208_v61  ;;  %v150_v53 = vld [vmem:[#allocation8 + $0xb8] sm:$0xff]  ;;  %v144_v54 = vld [vmem:[#allocation8 + $0x88] sm:$0xff] }
  0x46   :  { %399 = vmatpush.msrb.mxu1 %v141_v62  ;;  %289 = vmatmul.f32.gmra.mxu0 %v1382_v63  ;;  %v138_v55 = vld [vmem:[#allocation8 + $0x58] sm:$0xff]  ;;  %v132_v56 = vld [vmem:[#allocation8 + $0x28] sm:$0xff] }
  0x47   :  { %347 = vmatmul.f32.gmra.mxu2 %v1382_v63  ;;  %994 = vmatmul.msk.f32.vlgmr.msrb.gmra.mxu3 %vm257_vm0, %v1354_v11  ;;  %v692_v57 = vld [vmem:[#allocation11 + $0x68] sm:$0xff]  ;;  %v710_v59 = vld [vmem:[#allocation11 + $0xf8] sm:$0xff]  ;;  %v709_v60 = vld [vmem:[#allocation11 + $0xf0] sm:$0xff] }
  0x48   :  { %400 = vmatpush.msrb.mxu1 %v135_v1  ;;  %447 = vmatpush.msrb.mxu0 %v202_v2  ;;  %v708_v62 = vld [vmem:[#allocation11 + $0xe8] sm:$0xff]  ;;  %v707_v0 = vld [vmem:[#allocation11 + $0xe0] sm:$0xff]  ;;  %v706_v2 = vld [vmem:[#allocation11 + $0xd8] sm:$0xff] }
  0x49   :  { %604 = vmatpush.msra.mxu2 %v228_v15  ;;  %802 = vmatpush.msrb.mxu3 %v710_v59  ;;  %v687_v1 = vld [vmem:[#allocation11 + $0x40] sm:$0xff]  ;;  %v726_v3 = vld [vmem:[#allocation11 + $0x178] sm:$0xff] }
  0x4a   :  { %401 = vmatpush.msrb.mxu1 %v129_v4  ;;  %448 = vmatpush.msrb.mxu0 %v196_v5  ;;  %v686_v5 = vld [vmem:[#allocation11 + $0x38] sm:$0xff]  ;;  %v723_v15 = vld [vmem:[#allocation11 + $0x160] sm:$0xff] }
  0x4b   :  { %402 = vmatmul.f32.vlgmr.msrb.gmra.mxu1 %v1372_v51  ;;  %803 = vmatpush.msrb.mxu3 %v709_v60 }
  0x4c   :  { %502 = vmatpush.msra.mxu1 %v221_v6  ;;  %449 = vmatpush.msrb.mxu0 %v190_v7  ;;  %v705_v6 = vld [vmem:[#allocation11 + $0xd0] sm:$0xff] }
  0x4d   :  { %804 = vmatpush.msrb.mxu3 %v708_v62  ;;  %v725_v7 = vld [vmem:[#allocation11 + $0x170] sm:$0xff]  ;;  %v738_v62 = vld [vmem:[#allocation11 + $0x1d8] sm:$0xff] }
  0x4e   :  { %503 = vmatpush.msra.mxu1 %v215_v8  ;;  %292 = vmatmul.f32.gmra.mxu0 %v1389_v9 }
  0x4f   :  { %350 = vmatmul.f32.gmra.mxu2 %v1389_v9  ;;  %995 = vmatmul.msk.f32.gmra.mxu3 %vm257_vm0, %v1360_v23 }
  0x50   :  { %450 = vmatpush.msrb.mxu0 %v184_v10  ;;  %504 = vmatpush.msra.mxu1 %v209_v12  ;;  %v704_v10 = vld [vmem:[#allocation11 + $0xc8] sm:$0xff] }
  0x51   :  { %805 = vmatpush.msrb.mxu3 %v707_v0  ;;  %v724_v12 = vld [vmem:[#allocation11 + $0x168] sm:$0xff] }
  0x52   :  { %451 = vmatpush.msrb.mxu0 %v178_v13  ;;  %505 = vmatpush.msra.mxu1 %v203_v14  ;;  %v684_v13 = vld [vmem:[#allocation11 + $0x28] sm:$0xff]  ;;  %v703_v14 = vld [vmem:[#allocation11 + $0xc0] sm:$0xff] }
  0x53   :  { %405 = vmatmul.f32.gmra.mxu1 %v1382_v63  ;;  %806 = vmatpush.msrb.mxu3 %v706_v2  ;;  %v757_v2 = vld [vmem:[#allocation11 + $0x270] sm:$0xff] }
  0x54   :  { %452 = vmatpush.msrb.mxu0 %v172_v16  ;;  %506 = vmatpush.msra.mxu1 %v197_v17  ;;  %v683_v16 = vld [vmem:[#allocation11 + $0x20] sm:$0xff]  ;;  %v702_v17 = vld [vmem:[#allocation11 + $0xb8] sm:$0xff] }
  0x55   :  { %807 = vmatpush.msrb.mxu3 %v705_v6  ;;  %v736_v6 = vld [vmem:[#allocation11 + $0x1c8] sm:$0xff] }
  0x56   :  { %453 = vmatpush.msrb.mxu0 %v166_v18  ;;  %507 = vmatpush.msra.mxu1 %v191_v19  ;;  %v722_v18 = vld [vmem:[#allocation11 + $0x158] sm:$0xff] }
  0x57   :  { %295 = vmatmul.f32.gmra.mxu0 %v1396_v20  ;;  %353 = vmatmul.f32.gmra.mxu2 %v1396_v20 }
  0x58   :  { %996 = vmatmul.msk.f32.gmra.mxu3 %vm257_vm0, %v1366_v38  ;;  %454 = vmatpush.msrb.mxu0 %v160_v21  ;;  %v701_v21 = vld [vmem:[#allocation11 + $0xb0] sm:$0xff] }
  0x59   :  { %508 = vmatpush.msra.mxu1 %v185_v22  ;;  %808 = vmatpush.msrb.mxu3 %v704_v10  ;;  %v721_v22 = vld [vmem:[#allocation11 + $0x150] sm:$0xff] }
  0x5a   :  { %455 = vmatpush.msrb.mxu0 %v154_v24 }
  0x5b   :  { %509 = vmatpush.msra.mxu1 %v179_v25  ;;  %809 = vmatpush.msrb.mxu3 %v703_v14  ;;  %v681_v25 = vld [vmem:[#allocation11 + $0x10] sm:$0xff] }
  0x5c   :  { %408 = vmatmul.f32.gmra.mxu1 %v1389_v9  ;;  %456 = vmatpush.msrb.mxu0 %v148_v26  ;;  %v700_v26 = vld [vmem:[#allocation11 + $0xa8] sm:$0xff] }
  0x5d   :  { %510 = vmatpush.msra.mxu1 %v173_v27  ;;  %810 = vmatpush.msrb.mxu3 %v702_v17  ;;  %v720_v27 = vld [vmem:[#allocation11 + $0x148] sm:$0xff] }
  0x5e   :  { %457 = vmatpush.msrb.mxu0 %v142_v28 }
  0x5f   :  { %511 = vmatpush.msra.mxu1 %v167_v29  ;;  %998 = vmatmul.msk.f32.vlgmr.msrb.gmra.mxu2 %vm257_vm0, %v1354_v11  ;;  %v680_v29 = vld [vmem:[#allocation11 + $0x8] sm:$0xff] }
  0x60   :  { %997 = vmatmul.msk.f32.gmra.mxu3 %vm257_vm0, %v1374_v52  ;;  %458 = vmatpush.msrb.mxu0 %v136_v30  ;;  %v699_v30 = vld [vmem:[#allocation11 + $0xa0] sm:$0xff] }
  0x61   :  { %512 = vmatpush.msra.mxu1 %v161_v31  ;;  %811 = vmatpush.msrb.mxu3 %v701_v21  ;;  %v719_v31 = vld [vmem:[#allocation11 + $0x140] sm:$0xff] }
  0x62   :  { %459 = vmatpush.msrb.mxu0 %v130_v32  ;;  %v679_v32 = vld [vmem:[#allocation11] sm:$0xff] }
  0x63   :  { %513 = vmatpush.msra.mxu1 %v155_v33  ;;  %460 = vmatmul.f32.vlgmr.msrb.gmra.mxu0 %v1372_v51  ;;  %v698_v33 = vld [vmem:[#allocation11 + $0x98] sm:$0xff] }
  0x64   :  { %411 = vmatmul.f32.gmra.mxu1 %v1396_v20  ;;  %560 = vmatpush.msra.mxu0 %v222_v34  ;;  %v718_v34 = vld [vmem:[#allocation11 + $0x138] sm:$0xff] }
  0x65   :  { %514 = vmatpush.msra.mxu1 %v149_v35  ;;  %812 = vmatpush.msrb.mxu3 %v700_v26  ;;  %v697_v35 = vld [vmem:[#allocation11 + $0x90] sm:$0xff] }
  0x66   :  { %561 = vmatpush.msra.mxu0 %v216_v36  ;;  %v717_v36 = vld [vmem:[#allocation11 + $0x130] sm:$0xff] }
  0x67   :  { %515 = vmatpush.msra.mxu1 %v143_v37  ;;  %999 = vmatmul.msk.f32.gmra.mxu2 %vm257_vm0, %v1360_v23  ;;  %v1454_v37 = vld [vmem:[#allocation9] sm:$0x3f] }
  0x68   :  { %1002 = vmatmul.msk.f32.vlgmr.msra.gmra.mxu3 %vm257_vm0, %v1354_v11  ;;  %562 = vmatpush.msra.mxu0 %v210_v39 }
  0x69   :  { %516 = vmatpush.msra.mxu1 %v137_v40  ;;  %813 = vmatpush.msrb.mxu3 %v699_v30 }
  0x6a   :  { %563 = vmatpush.msra.mxu0 %v204_v41  ;;  %v696_v41 = vld [vmem:[#allocation11 + $0x88] sm:$0xff] }
  0x6b   :  { %517 = vmatpush.msra.mxu1 %v131_v42  ;;  %463 = vmatmul.f32.gmra.mxu0 %v1382_v63  ;;  %v716_v42 = vld [vmem:[#allocation11 + $0x128] sm:$0xff] }
  0x6c   :  { %518 = vmatmul.f32.vlgmr.msra.gmra.mxu1 %v1372_v51  ;;  %564 = vmatpush.msra.mxu0 %v198_v43 }
  0x6d   :  { %814 = vmatpush.msrb.mxu3 %v698_v33  ;;  %v732_v33 = vld [vmem:[#allocation11 + $0x1a8] sm:$0xff] }
  0x6e   :  { %565 = vmatpush.msra.mxu0 %v192_v44  ;;  %v1461_v44 = vperm.slane %v1454_v37, 0 }
  0x6f   :  { %1000 = vmatmul.msk.f32.gmra.mxu2 %vm257_vm0, %v1366_v38  ;;  %815 = vmatpush.msrb.mxu3 %v697_v35 }
  0x70   :  { %1003 = vmatmul.msk.f32.gmra.mxu3 %vm257_vm0, %v1360_v23  ;;  %566 = vmatpush.msra.mxu0 %v186_v45 }
  0x71   :  { %816 = vmatpush.msrb.mxu3 %v696_v41  ;;  %v731_v41 = vld [vmem:[#allocation11 + $0x1a0] sm:$0xff] }
  0x72   :  { %567 = vmatpush.msra.mxu0 %v180_v46  ;;  %v695_v46 = vld [vmem:[#allocation11 + $0x80] sm:$0xff] }
  0x73   :  { %466 = vmatmul.f32.gmra.mxu0 %v1389_v9  ;;  %817 = vmatpush.msrb.mxu3 %v695_v46 }
  0x74   :  { %521 = vmatmul.f32.gmra.mxu1 %v1382_v63  ;;  %568 = vmatpush.msra.mxu0 %v174_v47  ;;  %v715_v47 = vld [vmem:[#allocation11 + $0x120] sm:$0xff] }
  0x76   :  { %569 = vmatpush.msra.mxu0 %v168_v48  ;;  %v742_v48 = vld [vmem:[#allocation11 + $0x1f8] sm:$0xff] }
  0x77   :  { %1001 = vmatmul.msk.f32.gmra.mxu2 %vm257_vm0, %v1374_v52 }
  0x78   :  { %1004 = vmatmul.msk.f32.gmra.mxu3 %vm257_vm0, %v1366_v38  ;;  %570 = vmatpush.msra.mxu0 %v162_v49  ;;  %v714_v49 = vld [vmem:[#allocation11 + $0x118] sm:$0xff] }
  0x79   :  { %848 = vmatpush.msrb.mxu2 %v742_v48  ;;  %v730_v48 = vld [vmem:[#allocation11 + $0x198] sm:$0xff] }
  0x7a   :  { %571 = vmatpush.msra.mxu0 %v156_v50  ;;  %v741_v50 = vld [vmem:[#allocation11 + $0x1f0] sm:$0xff] }
  0x7b   :  { %469 = vmatmul.f32.gmra.mxu0 %v1396_v20  ;;  %849 = vmatpush.msrb.mxu2 %v741_v50 }
  0x7c   :  { %524 = vmatmul.f32.gmra.mxu1 %v1389_v9  ;;  %572 = vmatpush.msra.mxu0 %v150_v53  ;;  %v713_v53 = vld [vmem:[#allocation11 + $0x110] sm:$0xff] }
  0x7e   :  { %573 = vmatpush.msra.mxu0 %v144_v54  ;;  %v740_v54 = vld [vmem:[#allocation11 + $0x1e8] sm:$0xff] }
  0x7f   :  { %1006 = vmatmul.msk.f32.vlgmr.msra.gmra.mxu2 %vm257_vm0, %v1354_v11  ;;  %v694_v11 = vld [vmem:[#allocation11 + $0x78] sm:$0xff] }
  0x80   :  { %1005 = vmatmul.msk.f32.gmra.mxu3 %vm257_vm0, %v1374_v52  ;;  %574 = vmatpush.msra.mxu0 %v138_v55 }
  0x81   :  { %779 = vmatpush.msrb.mxu1 %v694_v11  ;;  %850 = vmatpush.msrb.mxu2 %v740_v54  ;;  %v712_v11 = vld [vmem:[#allocation11 + $0x108] sm:$0xff] }
  0x82   :  { %575 = vmatpush.msra.mxu0 %v132_v56 }
  0x83   :  { %576 = vmatmul.f32.vlgmr.msra.gmra.mxu0 %v1372_v51  ;;  %v693_v51 = vld [vmem:[#allocation11 + $0x70] sm:$0xff] }
  0x84   :  { %527 = vmatmul.f32.gmra.mxu1 %v1396_v20  ;;  %825 = vmatpush.msrb.mxu0 %v726_v3 }
  0x85   :  { %780 = vmatpush.msrb.mxu1 %v693_v51  ;;  %v739_v51 = vld [vmem:[#allocation11 + $0x1e0] sm:$0xff] }
  0x86   :  { %826 = vmatpush.msrb.mxu0 %v725_v7  ;;  %851 = vmatpush.msrb.mxu2 %v739_v51 }
  0x87   :  { %1007 = vmatmul.msk.f32.gmra.mxu2 %vm257_vm0, %v1360_v23  ;;  %781 = vmatpush.msrb.mxu1 %v692_v57  ;;  %v691_v23 = vld [vmem:[#allocation11 + $0x60] sm:$0xff]  ;;  %v1465_v57 = vperm.slane %v1454_v37, 1 }
  0x88   :  { %827 = vmatpush.msrb.mxu0 %v724_v12  ;;  %852 = vmatpush.msrb.mxu2 %v738_v62  ;;  %v735_v12 = vld [vmem:[#allocation11 + $0x1c0] sm:$0xff] }
  0x89   :  { %782 = vmatpush.msrb.mxu1 %v691_v23 }
  0x8a   :  { %828 = vmatpush.msrb.mxu0 %v723_v15 }
  0x8b   :  { %579 = vmatmul.f32.gmra.mxu0 %v1382_v63  ;;  %v688_v63 = vld [vmem:[#allocation11 + $0x48] sm:$0xff] }
  0x8c   :  { %829 = vmatpush.msrb.mxu0 %v722_v18  ;;  %v734_v18 = vld [vmem:[#allocation11 + $0x1b8] sm:$0xff] }
  0x8e   :  { %830 = vmatpush.msrb.mxu0 %v721_v22 }
  0x8f   :  { %1008 = vmatmul.msk.f32.gmra.mxu2 %vm257_vm0, %v1366_v38  ;;  %v690_v38 = vld [vmem:[#allocation11 + $0x58] sm:$0xff] }
  0x90   :  { %783 = vmatpush.msrb.mxu1 %v690_v38  ;;  %831 = vmatpush.msrb.mxu0 %v720_v27 }
  0x92   :  { %832 = vmatpush.msrb.mxu0 %v719_v31 }
  0x93   :  { %582 = vmatmul.f32.gmra.mxu0 %v1389_v9  ;;  %v685_v9 = vld [vmem:[#allocation11 + $0x30] sm:$0xff] }
  0x94   :  { %833 = vmatpush.msrb.mxu0 %v718_v34  ;;  %v752_v34 = vld [vmem:[#allocation11 + $0x248] sm:$0xff] }
  0x96   :  { %834 = vmatpush.msrb.mxu0 %v717_v36 }
  0x97   :  { %1009 = vmatmul.msk.f32.gmra.mxu2 %vm257_vm0, %v1374_v52  ;;  %v689_v52 = vld [vmem:[#allocation11 + $0x50] sm:$0xff] }
  0x98   :  { %784 = vmatpush.msrb.mxu1 %v689_v52  ;;  %835 = vmatpush.msrb.mxu0 %v716_v42  ;;  %v711_v52 = vld [vmem:[#allocation11 + $0x100] sm:$0xff] }
  0x99   :  { %v751_v42 = vld [vmem:[#allocation11 + $0x240] sm:$0xff] }
  0x9a   :  { %785 = vmatpush.msrb.mxu1 %v688_v63  ;;  %836 = vmatpush.msrb.mxu0 %v715_v47  ;;  %v758_v63 = vld [vmem:[#allocation11 + $0x278] sm:$0xff] }
  0x9b   :  { %585 = vmatmul.f32.gmra.mxu0 %v1396_v20  ;;  %v682_v20 = vld [vmem:[#allocation11 + $0x18] sm:$0xff] }
  0x9c   :  { %786 = vmatpush.msrb.mxu1 %v687_v1  ;;  %837 = vmatpush.msrb.mxu0 %v714_v49  ;;  %v737_v1 = vld [vmem:[#allocation11 + $0x1d0] sm:$0xff]  ;;  %v750_v49 = vld [vmem:[#allocation11 + $0x238] sm:$0xff] }
  0x9d   :  { %853 = vmatpush.msrb.mxu2 %v737_v1  ;;  %v747_v1 = vld [vmem:[#allocation11 + $0x220] sm:$0xff] }
  0x9e   :  { %787 = vmatpush.msrb.mxu1 %v686_v5  ;;  %838 = vmatpush.msrb.mxu0 %v713_v53 }
  0x9f   :  { %854 = vmatpush.msrb.mxu2 %v736_v6 }
  0xa0   :  { %788 = vmatpush.msrb.mxu1 %v685_v9  ;;  %839 = vmatpush.msrb.mxu0 %v712_v11  ;;  %v1473_v9 = vperm.slane %v1454_v37, 2  ;;  %v749_v11 = vld [vmem:[#allocation11 + $0x230] sm:$0xff] }
  0xa1   :  { %855 = vmatpush.msrb.mxu2 %v735_v12  ;;  %v746_v12 = vld [vmem:[#allocation11 + $0x218] sm:$0xff] }
  0xa2   :  { %789 = vmatpush.msrb.mxu1 %v684_v13  ;;  %840 = vmatpush.msrb.mxu0 %v711_v52  ;;  %v755_v13 = vld [vmem:[#allocation11 + $0x260] sm:$0xff] }
  0xa3   :  { %v1442_v58 = vpop.f32.mrf.mxu1  ;;  %856 = vmatpush.msrb.mxu2 %v734_v18 }
  0xa4   :  { %790 = vmatpush.msrb.mxu1 %v683_v16 }
  0xa6   :  { %791 = vmatpush.msrb.mxu1 %v682_v20 }
  0xa8   :  { %792 = vmatpush.msrb.mxu1 %v681_v25 }
  0xa9   :  { %v1444_v61 = vpop.f32.mrf.mxu3 }
  0xaa   :  { %793 = vmatpush.msrb.mxu1 %v680_v29  ;;  %v753_v29 = vld [vmem:[#allocation11 + $0x250] sm:$0xff] }
  0xac   :  { %794 = vmatpush.msrb.mxu1 %v679_v32 }
  0xad   :  { %v1446_v4 = vpop.f32.mrf.mxu1 }
  0xae   :  { %871 = vmatpush.msra.mxu1 %v758_v63 }
  0xb0   :  { %872 = vmatpush.msra.mxu1 %v757_v2 }
  0xb1   :  { %v1448_v8 = vpop.f32.mrf.mxu3 }
  0xb7   :  { %v1450_v19 = vpop.f32.mrf.mxu1 }
  0xb9   :  { %v1452_v24 = vpop.f32.mrf.mxu3 }
  0xbb   :  { %v287_v28 = vpop.f32.mrf.mxu0 }
  0xbc   :  { %v288_v55 = vadd.f32 %v287_v28, %v1461_v44  ;;  %v733_v28 = vld [vmem:[#allocation11 + $0x1b0] sm:$0xff] }
  0xbd   :  { %857 = vmatpush.msrb.mxu2 %v733_v28 }
  0xbe   :  { %v317_v38 = vadd.f32 %v1442_v58, %v288_v55  ;;  %v756_v58 = vld [vmem:[#allocation11 + $0x268] sm:$0xff] }
  0xbf   :  { %873 = vmatpush.msra.mxu1 %v756_v58  ;;  %858 = vmatpush.msrb.mxu2 %v732_v33 }
  0xc0   :  { %v1456_v39 = vpop.f32.mrf.mxu1  ;;  %1041 = vtanh.f32 %v317_v38  ;;  %v748_v38 = vld [vmem:[#allocation11 + $0x228] sm:$0xff] }
  0xc1   :  { %874 = vmatpush.msra.mxu1 %v755_v13  ;;  %859 = vmatpush.msrb.mxu2 %v731_v41  ;;  %v774_v13 = vld [vmem:[#allocation11 + $0x2f8] sm:$0xff] }
  0xc2   :  { %v345_v40 = vpop.f32.mrf.mxu2  ;;  %v1458_v43 = vpop.f32.mrf.mxu3  ;;  %894 = vmatpush.msra.mxu3 %v774_v13  ;;  %v761_v13 = vld [vmem:[#allocation11 + $0x290] sm:$0xff] }
  0xc3   :  { %v290_v45 = vpop.f32.mrf.mxu0  ;;  %v346_v3 = vadd.f32 %v345_v40, %v1465_v57  ;;  %860 = vmatpush.msrb.mxu2 %v730_v48 }
  0xc4   :  { %v291_v7 = vadd.f32 %v290_v45, %v1461_v44 }
  0xc5   :  { %v375_v14 = vadd.f32 %v1444_v61, %v346_v3 }
  0xc6   :  { %v320_v20 = vadd.f32 %v1446_v4, %v291_v7  ;;  %v1042_v25 = vpop.eup %1041  ;;  %v1487_v4 = vstv %s1524_s0 }
  0xc8   :  { %v403_v56 = vpop.f32.mrf.mxu1 }
  0xc9   :  { %v404_v21 = vadd.f32 %v403_v56, %v1473_v9  ;;  %v729_v56 = vld [vmem:[#allocation11 + $0x190] sm:$0xff] }
  0xca   :  { %v348_v23 = vpop.f32.mrf.mxu2  ;;  %v432_v59 = vpop.f32.mrf.mxu3  ;;  %861 = vmatpush.msrb.mxu2 %v729_v56 }
  0xcb   :  { %v293_v60 = vpop.f32.mrf.mxu0  ;;  %v349_v26 = vadd.f32 %v348_v23, %v1465_v57 }
  0xcc   :  { %v294_v0 = vadd.f32 %v293_v60, %v1461_v44 }
  0xcd   :  { %v378_v35 = vadd.f32 %v1448_v8, %v349_v26  ;;  %v248_v26 = vperm.slane %v1454_v37, 3 }
  0xce   :  { %v323_v5 = vadd.f32 %v1450_v19, %v294_v0  ;;  %v754_v19 = vld [vmem:[#allocation11 + $0x258] sm:$0xff]  ;;  %v727_v0 = vld [vmem:[#allocation11 + $0x180] sm:$0xff] }
  0xcf   :  { %875 = vmatpush.msra.mxu1 %v754_v19  ;;  %v773_v19 = vld [vmem:[#allocation11 + $0x2f0] sm:$0xff] }
  0xd0   :  { %1043 = vtanh.f32 %v323_v5  ;;  %v406_v10 = vpop.f32.mrf.mxu1  ;;  %895 = vmatpush.msra.mxu3 %v773_v19 }
  0xd1   :  { %1045 = vtanh.f32 %v375_v14  ;;  %876 = vmatpush.msra.mxu1 %v753_v29  ;;  %v407_v8 = vadd.f32 %v406_v10, %v1473_v9 }
  0xd2   :  { %v351_v15 = vpop.f32.mrf.mxu2  ;;  %v1476_v16 = vpop.f32.mrf.mxu3 }
  0xd3   :  { %v352_v17 = vadd.f32 %v351_v15, %v1465_v57  ;;  %877 = vmatpush.msra.mxu1 %v752_v34  ;;  %v436_v60 = vadd.f32 %v1476_v16, %v407_v8  ;;  %v771_v34 = vld [vmem:[#allocation11 + $0x2e0] sm:$0xff] }
  0xd4   :  { %v296_v22 = vpop.f32.mrf.mxu0 }
  0xd5   :  { %v381_v61 = vadd.f32 %v1452_v24, %v352_v17  ;;  %v297_v27 = vadd.f32 %v296_v22, %v1461_v44  ;;  %v433_v24 = vadd.f32 %v432_v59, %v404_v21  ;;  %878 = vmatpush.msra.mxu1 %v751_v42  ;;  %v728_v59 = vld [vmem:[#allocation11 + $0x188] sm:$0xff]  ;;  %v769_v42 = vld [vmem:[#allocation11 + $0x2d0] sm:$0xff] }
  0xd6   :  { %v1044_v30 = vpop.eup %1043  ;;  %862 = vmatpush.msrb.mxu2 %v728_v59  ;;  %v744_v21 = vld [vmem:[#allocation11 + $0x208] sm:$0xff] }
  0xd7   :  { %v642_v31 = vsub.f32 %v1042_v25, %v1044_v30  ;;  %1047 = vtanh.f32 %v381_v61  ;;  %v326_v32 = vadd.f32 %v1456_v39, %v297_v27  ;;  %v1046_v50 = vpop.eup %1045  ;;  %879 = vmatpush.msra.mxu1 %v750_v49  ;;  %v772_v22 = vld [vmem:[#allocation11 + $0x2e8] sm:$0xff] }
  0xd8   :  { %1049 = vtanh.f32 %v320_v20  ;;  %863 = vmatpush.msrb.mxu2 %v727_v0  ;;  %896 = vmatpush.msra.mxu3 %v772_v22  ;;  %v759_v22 = vld [vmem:[#allocation11 + $0x280] sm:$0xff] }
  0xd9   :  { %1051 = vtanh.f32 %v326_v32  ;;  %v409_v36 = vpop.f32.mrf.mxu1  ;;  %v655_v40 = vmul.f32 %v1487_v4, %v642_v31  ;;  %880 = vmatpush.msra.mxu1 %v749_v11 }
  0xda   :  { %v410_v44 = vadd.f32 %v409_v36, %v1473_v9  ;;  %v354_v45 = vpop.f32.mrf.mxu2  ;;  %1053 = vtanh.f32 %v433_v24  ;;  %897 = vmatpush.msra.mxu3 %v771_v34 }
  0xdb   :  { %v355_v39 = vadd.f32 %v354_v45, %v1465_v57  ;;  %v438_v46 = vpop.f32.mrf.mxu3  ;;  %v667_v47 = vadd.f32 %v1044_v30, %v655_v40  ;;  %1055 = vtanh.f32 %v378_v35  ;;  %881 = vmatpush.msra.mxu1 %v748_v38  ;;  %v743_v30 = vld [vmem:[#allocation11 + $0x200] sm:$0xff]  ;;  %v770_v40 = vld [vmem:[#allocation11 + $0x2d8] sm:$0xff] }
  0xdc   :  { %v439_v53 = vadd.f32 %v438_v46, %v410_v44  ;;  %898 = vmatpush.msra.mxu3 %v770_v40 }
  0xdd   :  { %v1048_v54 = vpop.eup %1047  ;;  %v384_v55 = vadd.f32 %v1458_v43, %v355_v39  ;;  %795 = vmatmul.f32.vlgmr.msrb.gmra.mxu1 %v667_v47  ;;  %v249_v39 = vperm.slane %v1454_v37, 4  ;;  %v768_v47 = vld [vmem:[#allocation11 + $0x2c8] sm:$0xff] }
  0xde   :  { %v1050_v51 = vpop.eup %1049  ;;  %v643_v57 = vsub.f32 %v1046_v50, %v1048_v54  ;;  %1057 = vtanh.f32 %v439_v53  ;;  %882 = vmatpush.msra.mxu1 %v747_v1  ;;  %899 = vmatpush.msra.mxu3 %v769_v42  ;;  %v767_v53 = vld [vmem:[#allocation11 + $0x2c0] sm:$0xff] }
  0xdf   :  { %v1052_v23 = vpop.eup %1051  ;;  %1059 = vtanh.f32 %v384_v55  ;;  %v763_v1 = vld [vmem:[#allocation11 + $0x2a0] sm:$0xff] }
  0xe0   :  { %v461_v52 = vpop.f32.mrf.mxu0  ;;  %v656_v62 = vmul.f32 %v1487_v4, %v643_v57  ;;  %v648_v63 = vsub.f32 %v1050_v51, %v1052_v23  ;;  %v1054_v2 = vpop.eup %1053  ;;  %1061 = vtanh.f32 %v436_v60  ;;  %883 = vmatpush.msra.mxu1 %v746_v12  ;;  %900 = vmatpush.msra.mxu3 %v768_v47  ;;  %v766_v51 = vld [vmem:[#allocation11 + $0x2b8] sm:$0xff]  ;;  %v765_v57 = vld [vmem:[#allocation11 + $0x2b0] sm:$0xff]  ;;  %v764_v60 = vld [vmem:[#allocation11 + $0x2a8] sm:$0xff] }
  0xe1   :  { %v412_v43 = vpop.f32.mrf.mxu1  ;;  %v1056_v7 = vpop.eup %1055  ;;  %v462_v36 = vadd.f32 %v461_v52, %v248_v26 }
  0xe2   :  { %v413_v3 = vadd.f32 %v412_v43, %v1473_v9  ;;  %v490_v5 = vpop.f32.mrf.mxu2  ;;  %v668_v6 = vadd.f32 %v1048_v54, %v656_v62  ;;  %v661_v58 = vmul.f32 %v1487_v4, %v648_v63  ;;  %v745_v9 = vld [vmem:[#allocation11 + $0x210] sm:$0xff]  ;;  %901 = vmatpush.msra.mxu3 %v767_v53 }
  0xe3   :  { %v441_v10 = vpop.f32.mrf.mxu3  ;;  %884 = vmatpush.msra.mxu1 %v745_v9  ;;  %v491_v45 = vadd.f32 %v490_v5, %v462_v36 }
  0xe4   :  { %v1058_v14 = vpop.eup %1057  ;;  %v442_v15 = vadd.f32 %v441_v10, %v413_v3  ;;  %818 = vmatmul.f32.vlgmr.msrb.gmra.mxu3 %v668_v6  ;;  %v673_v16 = vadd.f32 %v1052_v23, %v661_v58  ;;  %v762_v10 = vld [vmem:[#allocation11 + $0x298] sm:$0xff] }
  0xe5   :  { %v1060_v17 = vpop.eup %1059  ;;  %v644_v18 = vsub.f32 %v1054_v2, %v1058_v14  ;;  %885 = vmatpush.msra.mxu1 %v744_v21  ;;  %902 = vmatpush.msra.mxu3 %v766_v51 }
  0xe6   :  { %1063 = vtanh.f32 %v442_v15  ;;  %798 = vmatmul.f32.gmra.mxu1 %v673_v16  ;;  %v649_v20 = vsub.f32 %v1056_v7, %v1060_v17  ;;  %v1062_v31 = vpop.eup %1061 }
  0xe7   :  { %v657_v25 = vmul.f32 %v1487_v4, %v644_v18  ;;  %886 = vmatpush.msra.mxu1 %v743_v30  ;;  %1065 = vtanh.f32 %v491_v45  ;;  %903 = vmatpush.msra.mxu3 %v765_v57 }
  0xe8   :  { %v464_v61 = vpop.f32.mrf.mxu0  ;;  %v662_v27 = vmul.f32 %v1487_v4, %v649_v20 }
  0xe9   :  { %v519_v28 = vpop.f32.mrf.mxu1  ;;  %v669_v29 = vadd.f32 %v1058_v14, %v657_v25  ;;  %v465_v54 = vadd.f32 %v464_v61, %v248_v26  ;;  %904 = vmatpush.msra.mxu3 %v764_v60 }
  0xea   :  { %v493_v32 = vpop.f32.mrf.mxu2  ;;  %v674_v33 = vadd.f32 %v1060_v17, %v662_v27  ;;  %v520_v11 = vadd.f32 %v519_v28, %v249_v39  ;;  %v760_v17 = vld [vmem:[#allocation11 + $0x288] sm:$0xff] }
  0xeb   :  { %v548_v24 = vpop.f32.mrf.mxu3  ;;  %841 = vmatmul.f32.vlgmr.msrb.gmra.mxu0 %v669_v29  ;;  %v494_v23 = vadd.f32 %v493_v32, %v465_v54  ;;  %905 = vmatpush.msra.mxu3 %v763_v1  ;;  %v250_v32 = vperm.slane %v1454_v37, 5  ;;  %v931_v1 = vld [vmem:[#allocation12 + $0x60] sm:$0xff] }
  0xec   :  { %v1064_v35 = vpop.eup %1063  ;;  %821 = vmatmul.f32.gmra.mxu3 %v674_v33  ;;  %v549_v59 = vadd.f32 %v548_v24, %v520_v11 }
  0xed   :  { %v650_v41 = vsub.f32 %v1062_v31, %v1064_v35  ;;  %v1066_v63 = vpop.eup %1065  ;;  %906 = vmatpush.msra.mxu3 %v762_v10  ;;  %v923_v10 = vld [vmem:[#allocation12 + $0x20] sm:$0xff] }
  0xef   :  { %v663_v44 = vmul.f32 %v1487_v4, %v650_v41  ;;  %907 = vmatpush.msra.mxu3 %v761_v13  ;;  %v921_v13 = vld [vmem:[#allocation12 + $0x10] sm:$0xff] }
  0xf0   :  { %v467_v46 = vpop.f32.mrf.mxu0 }
  0xf1   :  { %v468_v48 = vadd.f32 %v467_v46, %v248_v26  ;;  %v522_v49 = vpop.f32.mrf.mxu1  ;;  %v675_v50 = vadd.f32 %v1064_v35, %v663_v44  ;;  %908 = vmatpush.msra.mxu3 %v760_v17 }
  0xf2   :  { %v496_v8 = vpop.f32.mrf.mxu2  ;;  %v523_v6 = vadd.f32 %v522_v49, %v249_v39 }
  0xf3   :  { %v497_v55 = vadd.f32 %v496_v8, %v468_v48  ;;  %v551_v56 = vpop.f32.mrf.mxu3  ;;  %844 = vmatmul.f32.gmra.mxu0 %v675_v50  ;;  %909 = vmatpush.msra.mxu3 %v759_v22 }
  0xf4   :  { %v552_v14 = vadd.f32 %v551_v56, %v523_v6  ;;  %v926_v6 = vld [vmem:[#allocation12 + $0x38] sm:$0xff] }
  0xf5   :  { %1067 = vtanh.f32 %v497_v55 }
  0xf6   :  { %1069 = vtanh.f32 %v494_v23 }
  0xf7   :  { %1071 = vtanh.f32 %v549_v59 }
  0xf8   :  { %v470_v38 = vpop.f32.mrf.mxu0 }
  0xf9   :  { %v471_v52 = vadd.f32 %v470_v38, %v248_v26  ;;  %v525_v62 = vpop.f32.mrf.mxu1 }
  0xfa   :  { %v526_v43 = vadd.f32 %v525_v62, %v249_v39  ;;  %v499_v0 = vpop.f32.mrf.mxu2 }
  0xfb   :  { %v1068_v2 = vpop.eup %1067  ;;  %v500_v3 = vadd.f32 %v499_v0, %v471_v52  ;;  %v554_v5 = vpop.f32.mrf.mxu3  ;;  %v932_v0 = vld [vmem:[#allocation12 + $0x68] sm:$0xff] }
  0xfc   :  { %v645_v58 = vsub.f32 %v1066_v63, %v1068_v2  ;;  %v555_v7 = vadd.f32 %v554_v5, %v526_v43  ;;  %v1070_v18 = vpop.eup %1069  ;;  %v934_v63 = vld [vmem:[#allocation12 + $0x78] sm:$0xff]  ;;  %v933_v43 = vld [vmem:[#allocation12 + $0x70] sm:$0xff]  ;;  %v928_v5 = vld [vmem:[#allocation12 + $0x48] sm:$0xff] }
  0xfd   :  { %1073 = vtanh.f32 %v500_v3  ;;  %v1072_v19 = vpop.eup %1071  ;;  %939 = vmatpush.msra.mxu0 %v934_v63  ;;  %1010 = vmatpush.msra.mxu2 %v934_v63  ;;  %v929_v3 = vld [vmem:[#allocation12 + $0x50] sm:$0xff] }
  0xfe   :  { %1075 = vtanh.f32 %v555_v7  ;;  %v658_v12 = vmul.f32 %v1487_v4, %v645_v58  ;;  %v925_v58 = vld [vmem:[#allocation12 + $0x30] sm:$0xff]  ;;  %v924_v7 = vld [vmem:[#allocation12 + $0x28] sm:$0xff] }
  0xff   :  { %1077 = vtanh.f32 %v552_v14  ;;  %940 = vmatpush.msra.mxu0 %v933_v43  ;;  %1011 = vmatpush.msra.mxu2 %v933_v43  ;;  %v920_v14 = vld [vmem:[#allocation12 + $0x8] sm:$0xff] }
 0x100   :  { %v577_v15 = vpop.f32.mrf.mxu0  ;;  %v670_v16 = vadd.f32 %v1068_v2, %v658_v12  ;;  %v930_v2 = vld [vmem:[#allocation12 + $0x58] sm:$0xff] }
 0x101   :  { %v528_v9 = vpop.f32.mrf.mxu1  ;;  %v578_v41 = vadd.f32 %v577_v15, %v250_v32  ;;  %941 = vmatpush.msra.mxu0 %v932_v0  ;;  %1012 = vmatpush.msra.mxu2 %v932_v0  ;;  %v922_v12 = vld [vmem:[#allocation12 + $0x18] sm:$0xff]  ;;  %v919_v15 = vld [vmem:[#allocation12] sm:$0xff] }
 0x102   :  { %v529_v20 = vadd.f32 %v528_v9, %v249_v39  ;;  %v606_v21 = vpop.f32.mrf.mxu2  ;;  %864 = vmatmul.f32.vlgmr.msrb.gmra.mxu2 %v670_v16 }
 0x103   :  { %v1074_v25 = vpop.eup %1073  ;;  %v557_v26 = vpop.f32.mrf.mxu3  ;;  %v607_v45 = vadd.f32 %v606_v21, %v578_v41  ;;  %942 = vmatpush.msra.mxu0 %v931_v1  ;;  %1013 = vmatpush.msra.mxu2 %v931_v1 }
 0x104   :  { %v1076_v61 = vpop.eup %1075  ;;  %v558_v27 = vadd.f32 %v557_v26, %v529_v20  ;;  %v651_v28 = vsub.f32 %v1070_v18, %v1074_v25  ;;  %v1039_v18 = vld [vmem:[%s1530_s6] ss:$0 sm:$0xff] }
 0x105   :  { %v646_v29 = vsub.f32 %v1072_v19, %v1076_v61  ;;  %v1078_v35 = vpop.eup %1077  ;;  %943 = vmatpush.msra.mxu0 %v930_v2  ;;  %1014 = vmatpush.msra.mxu2 %v930_v2 }
 0x106   :  { %1079 = vtanh.f32 %v558_v27  ;;  %v664_v30 = vmul.f32 %v1487_v4, %v651_v28 }
 0x107   :  { %v659_v31 = vmul.f32 %v1487_v4, %v646_v29  ;;  %1081 = vtanh.f32 %v607_v45  ;;  %944 = vmatpush.msra.mxu0 %v929_v3  ;;  %1015 = vmatpush.msra.mxu2 %v929_v3 }
 0x108   :  { %v580_v33 = vpop.f32.mrf.mxu0  ;;  %v676_v34 = vadd.f32 %v1074_v25, %v664_v30 }
 0x109   :  { %v671_v24 = vadd.f32 %v1076_v61, %v659_v31  ;;  %v581_v37 = vadd.f32 %v580_v33, %v250_v32  ;;  %945 = vmatpush.msra.mxu0 %v928_v5  ;;  %1016 = vmatpush.msra.mxu2 %v928_v5 }
 0x10a   :  { %v609_v36 = vpop.f32.mrf.mxu2  ;;  %867 = vmatmul.f32.gmra.mxu2 %v676_v34 }
 0x10b   :  { %887 = vmatmul.f32.vlgmr.msra.gmra.mxu1 %v671_v24  ;;  %v610_v50 = vadd.f32 %v609_v36, %v581_v37 }
 0x10c   :  { %v1080_v40 = vpop.eup %1079 }
 0x10d   :  { %v652_v42 = vsub.f32 %v1078_v35, %v1080_v40  ;;  %v1082_v54 = vpop.eup %1081 }
 0x10f   :  { %v665_v44 = vmul.f32 %v1487_v4, %v652_v42 }
 0x110   :  { %v583_v39 = vpop.f32.mrf.mxu0 }
 0x111   :  { %v584_v46 = vadd.f32 %v583_v39, %v250_v32  ;;  %v677_v47 = vadd.f32 %v1080_v40, %v665_v44  ;;  %v1040_v39 = vld [vmem:[%s1532_s8] ss:$0 sm:$0xff] }
 0x112   :  { %v612_v48 = vpop.f32.mrf.mxu2 }
 0x113   :  { %v613_v49 = vadd.f32 %v612_v48, %v584_v46  ;;  %890 = vmatmul.f32.gmra.mxu1 %v677_v47 }
 0x115   :  { %1083 = vtanh.f32 %v613_v49 }
 0x116   :  { %1085 = vtanh.f32 %v610_v50 }
 0x118   :  { %v586_v8 = vpop.f32.mrf.mxu0 }
 0x119   :  { %v587_v53 = vadd.f32 %v586_v8, %v250_v32 }
 0x11a   :  { %v615_v55 = vpop.f32.mrf.mxu2 }
 0x11b   :  { %v1084_v56 = vpop.eup %1083  ;;  %v616_v11 = vadd.f32 %v615_v55, %v587_v53 }
 0x11c   :  { %v647_v51 = vsub.f32 %v1082_v54, %v1084_v56  ;;  %v1086_v59 = vpop.eup %1085 }
 0x11d   :  { %1087 = vtanh.f32 %v616_v11 }
 0x11e   :  { %v660_v57 = vmul.f32 %v1487_v4, %v647_v51 }
 0x120   :  { %v672_v23 = vadd.f32 %v1084_v56, %v660_v57 }
 0x122   :  { %910 = vmatmul.f32.vlgmr.msra.gmra.mxu3 %v672_v23 }
 0x123   :  { %v1088_v38 = vpop.eup %1087 }
 0x124   :  { %v653_v60 = vsub.f32 %v1086_v59, %v1088_v38 }
 0x126   :  { %v666_v52 = vmul.f32 %v1487_v4, %v653_v60  ;;  %v927_v4 = vld [vmem:[#allocation12 + $0x40] sm:$0xff] }
 0x127   :  { %946 = vmatpush.msra.mxu0 %v927_v4  ;;  %1017 = vmatpush.msra.mxu2 %v927_v4 }
 0x128   :  { %v678_v62 = vadd.f32 %v1088_v38, %v666_v52 }
 0x129   :  { %947 = vmatpush.msra.mxu0 %v926_v6  ;;  %1018 = vmatpush.msra.mxu2 %v926_v6 }
 0x12a   :  { %913 = vmatmul.f32.gmra.mxu3 %v678_v62 }
 0x12b   :  { %948 = vmatpush.msra.mxu0 %v925_v58  ;;  %1019 = vmatpush.msra.mxu2 %v925_v58 }
 0x12d   :  { %949 = vmatpush.msra.mxu0 %v924_v7  ;;  %1020 = vmatpush.msra.mxu2 %v924_v7 }
 0x12f   :  { %950 = vmatpush.msra.mxu0 %v923_v10  ;;  %1021 = vmatpush.msra.mxu2 %v923_v10 }
 0x131   :  { %951 = vmatpush.msra.mxu0 %v922_v12  ;;  %1022 = vmatpush.msra.mxu2 %v922_v12 }
 0x133   :  { %952 = vmatpush.msra.mxu0 %v921_v13  ;;  %1023 = vmatpush.msra.mxu2 %v921_v13 }
 0x135   :  { %953 = vmatpush.msra.mxu0 %v920_v14  ;;  %1024 = vmatpush.msra.mxu2 %v920_v14 }
 0x137   :  { %954 = vmatpush.msra.mxu0 %v919_v15  ;;  %1025 = vmatpush.msra.mxu2 %v919_v15 }
 0x15a   :  { %v796_v16 = vpop.f32.mrf.mxu1 }
 0x15b   :  { %v797_v19 = vadd.f32 %v1039_v18, %v796_v16 }
 0x163   :  { %v799_v9 = vpop.f32.mrf.mxu1 }
 0x164   :  { %v800_v27 = vadd.f32 %v1039_v18, %v799_v9 }
 0x167   :  { %v819_v17 = vpop.f32.mrf.mxu3 }
 0x168   :  { %v842_v20 = vpop.f32.mrf.mxu0  ;;  %v820_v21 = vadd.f32 %v819_v17, %v797_v19 }
 0x16a   :  { %v843_v26 = vadd.f32 %v842_v20, %v820_v21 }
 0x16f   :  { %v822_v25 = vpop.f32.mrf.mxu3 }
 0x170   :  { %v823_v29 = vadd.f32 %v822_v25, %v800_v27  ;;  %v845_v30 = vpop.f32.mrf.mxu0 }
 0x172   :  { %v846_v34 = vadd.f32 %v845_v30, %v823_v29 }
 0x185   :  { %v865_v22 = vpop.f32.mrf.mxu2 }
 0x186   :  { %v866_v28 = vadd.f32 %v865_v22, %v843_v26 }
 0x188   :  { %v888_v61 = vpop.f32.mrf.mxu1 }
 0x189   :  { %v889_v31 = vadd.f32 %v888_v61, %v866_v28 }
 0x18d   :  { %v868_v32 = vpop.f32.mrf.mxu2 }
 0x18e   :  { %v869_v35 = vadd.f32 %v868_v32, %v846_v34 }
 0x190   :  { %v891_v40 = vpop.f32.mrf.mxu1 }
 0x191   :  { %v892_v41 = vadd.f32 %v891_v40, %v869_v35 }
 0x1a5   :  { %v911_v33 = vpop.f32.mrf.mxu3 }
 0x1a6   :  { %v912_v24 = vadd.f32 %v911_v33, %v889_v31 }
 0x1a8   :  { %v917_v36 = vmax.f32 %v912_v24, 0.0 }
 0x1aa   :  { %955 = vmatmul.f32.vlgmr.msra.gmra.mxu0 %v917_v36 }
 0x1ad   :  { %v914_v42 = vpop.f32.mrf.mxu3 }
 0x1ae   :  { %v915_v44 = vadd.f32 %v914_v42, %v892_v41 }
 0x1b0   :  { %v918_v45 = vmax.f32 %v915_v44, 0.0 }
 0x1b2   :  { %958 = vmatmul.f32.vlgmr.msra.gmra.mxu2 %v918_v45 }
 0x227   :  { %v956_v46 = vpop.f32.mrf.mxu0 }
 0x228   :  { %v957_v47 = vadd.f32 %v1040_v39, %v956_v46 }
 0x22a   :  { %962 = vst [vmem:[#allocation14] sm:$0xff] %v957_v47 }
 0x235   :  { %v959_v48 = vpop.f32.mrf.mxu2 }
 0x236   :  { %v960_v49 = vadd.f32 %v1040_v39, %v959_v48 }
 0x238   :  { %963 = vst [vmem:[#allocation14 + $0x8] sm:$0xff] %v960_v49 }
 0x239   :  { %976 = dma.vmem_to_hbm [thread:$0]  %s969_s23, 256, %s971_s25, [#allocation5], %s1276_s16, %s1276_s16, %s1277_s17  }
 0x23a   :  { %1265 = dma.done.wait [#allocation5], 256  }
 0x23b   :  { %1266 = vsyncadd [#allocation5], 4294967040 }
 0x23c   :  { %981 = vsyncpa [#allocation4], 1 }
 0x23d   :  { %982 = vsyncpa [#allocation7], 1 }
 0x23e   :  { %983 = vsyncpa [#allocation10], 1 }
 0x23f   :  { %984 = vsyncpa [#allocation13], 1 }
 0x240   :  { %985 = vsyncpa [#allocation5], 1 }

</bundles_post_ra>
